<compile_context>
chip_gen: v5e
topology: v5e:2x2
jax: 0.10.0
libtpu: 0.0.40
codegen_flags: <defaults>
</compile_context>

<pallas_src>
import math

import jax
import jax.numpy as jnp
from jax.experimental import pallas as pl
from jax.experimental.pallas import tpu as pltpu

# ----------------------- small synthetic BERT config -----------------------
VOCAB = 128          # plays the role of tokenizer.vocab_size
HIDDEN = 32          # encoder hidden size
N_HEADS = 2
HEAD_DIM = HIDDEN // N_HEADS
FFN = 64
N_LAYERS = 2
MAX_POS = 16
PAD_ID = 0           # bert pad_token_id (= CrossEntropyLoss ignore_index)
LN_EPS = 1e-12
_NEG_INF = -1e9

_WEIGHT_KEYS = ("emb_ln", "w_qkv", "b_qkv", "w_o", "w_ff1", "b_ff1", "w_ff2",
                "vec_h", "cls_w", "cls_b")


# --------------------------- in-kernel helpers ---------------------------
def _layernorm(x, g, b):
    mu = jnp.mean(x, axis=-1, keepdims=True)
    var = jnp.mean(jnp.square(x - mu), axis=-1, keepdims=True)
    return (x - mu) * jax.lax.rsqrt(var + LN_EPS) * g + b


def _encoder_logits(h_ref, mask_ref, wrefs):
    """Fused body for ONE batch element: embedding LN -> encoder layers -> classifier logits (S,V)."""
    (emb_ln_ref, w_qkv_ref, b_qkv_ref, w_o_ref, w_ff1_ref, b_ff1_ref,
     w_ff2_ref, vec_h_ref, cls_w_ref, cls_b_ref) = wrefs

    mask = mask_ref[0]                                 # (1, S) additive key-padding bias
    eln = emb_ln_ref[...]                              # (2, H): [gamma, beta]
    h = _layernorm(h_ref[0], eln[0], eln[1])           # (S, H) f32
    scale = 1.0 / math.sqrt(HEAD_DIM)

    for li in range(N_LAYERS):                         # static unroll; weights stay VMEM-resident
        vh = vec_h_ref[li]                             # (6, H): [bo, ln1_g, ln1_b, b2, ln2_g, ln2_b]

        # Fused QKV: one (S,H)@(H,3H) bf16 matmul (f32 accumulate) instead of 3*NH tiny ones.
        qkv = jnp.dot(h.astype(jnp.bfloat16), w_qkv_ref[li],
                      preferred_element_type=jnp.float32) + b_qkv_ref[li]
        qkvb = qkv.astype(jnp.bfloat16)                # cast once; per-head slices reuse it

        ctx_heads = []
        for hh in range(N_HEADS):                      # tiny static loop; only scores are per-head
            o = hh * HEAD_DIM
            q = qkvb[:, o:o + HEAD_DIM]
            k = qkvb[:, HIDDEN + o:HIDDEN + o + HEAD_DIM]
            v = qkvb[:, 2 * HIDDEN + o:2 * HIDDEN + o + HEAD_DIM]
            s = jax.lax.dot_general(q, k, (((1,), (1,)), ((), ())),
                                    preferred_element_type=jnp.float32) * scale + mask
            m = jnp.max(s, axis=-1, keepdims=True)
            p = jnp.exp(s - m)
            p = p * pl.reciprocal(jnp.sum(p, axis=-1, keepdims=True), approx=True)
            ctx_heads.append(jnp.dot(p.astype(jnp.bfloat16), v,
                                     preferred_element_type=jnp.float32))

        # Fused output projection: sum_h ctx_h @ Wo_h == concat(ctx) @ Wo  (one (S,H)@(H,H) matmul).
        ctx = jnp.concatenate(ctx_heads, axis=-1)      # (S, H)
        attn = jnp.dot(ctx.astype(jnp.bfloat16), w_o_ref[li],
                       preferred_element_type=jnp.float32) + vh[0]
        h = _layernorm(attn + h, vh[1], vh[2])

        ff = jnp.dot(h.astype(jnp.bfloat16), w_ff1_ref[li],
                     preferred_element_type=jnp.float32) + b_ff1_ref[li]
        # TODO(synk): HF bert-base-chinese uses erf-GELU; tanh approximation used (EUP-friendly).
        ff = jax.nn.gelu(ff, approximate=True)
        ff = jnp.dot(ff.astype(jnp.bfloat16), w_ff2_ref[li],
                     preferred_element_type=jnp.float32) + vh[3]
        h = _layernorm(ff + h, vh[4], vh[5])

    # Classifier head: (S, V=128) -> 128-lane-dense output.
    logits = jnp.dot(h.astype(jnp.bfloat16), cls_w_ref[...],
                     preferred_element_type=jnp.float32) + cls_b_ref[...]
    return logits


def _probs_kernel(h_ref, mask_ref, *rest):
    *wrefs, out_ref = rest
    logits = _encoder_logits(h_ref, mask_ref, tuple(wrefs))
    m = jnp.max(logits, axis=-1, keepdims=True)
    e = jnp.exp(logits - m)
    out_ref[0] = e / jnp.sum(e, axis=-1, keepdims=True)   # exact divide (parity with torch.softmax)


def _loss_kernel(h_ref, mask_ref, y_ref, *rest):
    *wrefs, out_ref = rest
    logits = _encoder_logits(h_ref, mask_ref, tuple(wrefs))    # (S, V) f32
    y = y_ref[0]                                               # (S, 1) int32
    m = jnp.max(logits, axis=-1, keepdims=True)
    lse = jnp.log(jnp.sum(jnp.exp(logits - m), axis=-1, keepdims=True)) + m   # exact loss path
    vocab_ids = jax.lax.broadcasted_iota(jnp.int32, logits.shape, 1)
    picked = jnp.sum(jnp.where(vocab_ids == y, logits, 0.0), axis=-1, keepdims=True)
    valid = (y != PAD_ID).astype(jnp.float32)                  # ignore_index = pad_token_id
    num = jnp.sum((lse - picked) * valid, axis=0, keepdims=True)   # (1, 1) partial CE sum
    den = jnp.sum(valid, axis=0, keepdims=True)                    # (1, 1) valid-token count
    lane = jax.lax.broadcasted_iota(jnp.int32, (1, VOCAB), 1)
    out_ref[0] = jnp.where(lane == 0, num, 0.0) + jnp.where(lane == 1, den, 0.0)


# ------------------------------ wrappers ------------------------------
def _const_spec(arr):
    zeros = (0,) * arr.ndim
    return pl.BlockSpec(arr.shape, lambda b, _z=zeros: _z)     # weights: whole-array, fetched once


def init_params(seed=0):
    key = jax.random.PRNGKey(seed)
    ks = jax.random.split(key, 10)
    L, H, F, V = N_LAYERS, HIDDEN, FFN, VOCAB

    def nrm(k, shape, dtype=jnp.bfloat16):
        return (0.02 * jax.random.normal(k, shape, dtype=jnp.float32)).astype(dtype)

    # per-layer H-wide vectors packed as (L, 6, H): [bo, ln1_g, ln1_b, b2, ln2_g, ln2_b]
    vec_h = jnp.zeros((L, 6, H), jnp.float32)
    vec_h = vec_h.at[:, 1, :].set(1.0).at[:, 4, :].set(1.0)

    return {
        # embedding tables (gathered in plain JAX)
        "word_emb": nrm(ks[0], (V, H), jnp.float32),
        "pos_emb": nrm(ks[1], (MAX_POS, H), jnp.float32),
        "type_emb": nrm(ks[2], (2, H), jnp.float32),
        # packed kernel parameters (bf16 matmul weights, f32 vectors)
        "emb_ln": jnp.concatenate([jnp.ones((1, H), jnp.float32),
                                   jnp.zeros((1, H), jnp.float32)], axis=0),
        "w_qkv": nrm(ks[3], (L, H, 3 * H)),          # fused [Wq | Wk | Wv]
        "b_qkv": jnp.zeros((L, 1, 3 * H), jnp.float32),
        "w_o": nrm(ks[4], (L, H, H)),                # head rows stacked: concat(ctx) @ Wo
        "w_ff1": nrm(ks[5], (L, H, F)),
        "b_ff1": jnp.zeros((L, 1, F), jnp.float32),
        "w_ff2": nrm(ks[6], (L, F, H)),
        "vec_h": vec_h,
        "cls_w": nrm(ks[7], (H, V)),
        "cls_b": jnp.zeros((1, V), jnp.float32),
    }


def language_model_forward(params, x, attention_mask=None, y=None):
    """Mirrors LanguageModel.forward (dropout is defined but unused in the torch forward)."""
    B, S = x.shape
    if attention_mask is None:
        attention_mask = jnp.ones((B, S), dtype=jnp.int32)

    # TODO(synk): token-embedding gather stays in plain JAX (data-dependent gather; not the hot path).
    emb = (params["word_emb"][x]
           + params["pos_emb"][:S][None, :, :]
           + params["type_emb"][0][None, None, :])
    h0 = emb.astype(jnp.float32)                                       # (B, S, H)

    # Per-batch additive key-padding bias, (B, 1, S): linear in B (no block-diagonal (BS,BS) mask).
    mask_bias = jnp.where(attention_mask > 0, 0.0, _NEG_INF).astype(jnp.float32).reshape(B, 1, S)

    wts = tuple(params[k] for k in _WEIGHT_KEYS)
    w_specs = [_const_spec(w) for w in wts]
    h_spec = pl.BlockSpec((1, S, HIDDEN), lambda b: (b, 0, 0))
    m_spec = pl.BlockSpec((1, 1, S), lambda b: (b, 0, 0))
    cparams = pltpu.CompilerParams(dimension_semantics=("parallel",))  # v7x: shard batch over 2 TCs

    if y is not None:
        y_spec = pl.BlockSpec((1, S, 1), lambda b: (b, 0, 0))
        parts = pl.pallas_call(
            _loss_kernel,
            grid=(B,),
            out_shape=jax.ShapeDtypeStruct((B, 1, VOCAB), jnp.float32),
            in_specs=[h_spec, m_spec, y_spec] + w_specs,
            out_specs=pl.BlockSpec((1, 1, VOCAB), lambda b: (b, 0, 0)),
            compiler_params=cparams,
        )(h0, mask_bias, y.reshape(B, S, 1).astype(jnp.int32), *wts)
        num = jnp.sum(parts[:, 0, 0])
        # TODO(synk): torch CE with every target ignored yields NaN; denom clamped to 1 gives 0 instead.
        den = jnp.maximum(jnp.sum(parts[:, 0, 1]), 1.0)
        return num / den

    probs = pl.pallas_call(
        _probs_kernel,
        grid=(B,),
        out_shape=jax.ShapeDtypeStruct((B, S, VOCAB), jnp.float32),
        in_specs=[h_spec, m_spec] + w_specs,
        out_specs=pl.BlockSpec((1, S, VOCAB), lambda b: (b, 0, 0)),
        compiler_params=cparams,
    )(h0, mask_bias, *wts)
    return probs


# ---------------------------------- main ----------------------------------
if __name__ == "__main__":
    params = init_params(0)
    key = jax.random.PRNGKey(0)
    kx, ky = jax.random.split(key)

    B, S = 2, 8
    x = jax.random.randint(kx, (B, S), 1, VOCAB, dtype=jnp.int32)
    attention_mask = jnp.ones((B, S), dtype=jnp.int32)
    y = jax.random.randint(ky, (B, S), 0, VOCAB, dtype=jnp.int32)

    fwd = jax.jit(language_model_forward)
    probs = fwd(params, x, attention_mask)              # inference branch: softmax(logits)
    loss = fwd(params, x, attention_mask, y=y)          # training branch: masked cross-entropy

    jax.block_until_ready((probs, loss))
    assert probs.shape == (B, S, VOCAB)
    assert loss.shape == ()
    assert bool(jnp.isfinite(loss))
    print("KERNEL_OK")
</pallas_src>

<mosaic_0001>
module attributes {stable_mosaic.version = 11 : i64} {
  func.func @_probs_kernel(%arg0: i32, %arg1: memref<1x8x32xf32, #tpu.memory_space<vmem>>, %arg2: memref<1x1x8xf32, #tpu.memory_space<vmem>>, %arg3: memref<2x32xf32, #tpu.memory_space<vmem>>, %arg4: memref<2x32x96xbf16, #tpu.memory_space<vmem>>, %arg5: memref<2x1x96xf32, #tpu.memory_space<vmem>>, %arg6: memref<2x32x32xbf16, #tpu.memory_space<vmem>>, %arg7: memref<2x32x64xbf16, #tpu.memory_space<vmem>>, %arg8: memref<2x1x64xf32, #tpu.memory_space<vmem>>, %arg9: memref<2x64x32xbf16, #tpu.memory_space<vmem>>, %arg10: memref<2x6x32xf32, #tpu.memory_space<vmem>>, %arg11: memref<32x128xbf16, #tpu.memory_space<vmem>>, %arg12: memref<1x128xf32, #tpu.memory_space<vmem>>, %arg13: memref<1x8x128xf32, #tpu.memory_space<vmem>>) attributes {dimension_semantics = [#tpu.dimension_semantics<parallel>], iteration_bounds = array<i64: 2>, scalar_prefetch = 0 : i64, scratch_operands = 0 : i64, tpu.core_type = #tpu.core_type<tc>, window_params = [{transform_indices = @transform_0, window_bounds = array<i64: 1, 8, 32>}, {transform_indices = @transform_1, window_bounds = array<i64: 1, 1, 8>}, {pipeline_mode = #tpu.pipeline_mode<synchronous>, transform_indices = @transform_2, window_bounds = array<i64: 2, 32>}, {pipeline_mode = #tpu.pipeline_mode<synchronous>, transform_indices = @transform_3, window_bounds = array<i64: 2, 32, 96>}, {pipeline_mode = #tpu.pipeline_mode<synchronous>, transform_indices = @transform_4, window_bounds = array<i64: 2, 1, 96>}, {pipeline_mode = #tpu.pipeline_mode<synchronous>, transform_indices = @transform_5, window_bounds = array<i64: 2, 32, 32>}, {pipeline_mode = #tpu.pipeline_mode<synchronous>, transform_indices = @transform_6, window_bounds = array<i64: 2, 32, 64>}, {pipeline_mode = #tpu.pipeline_mode<synchronous>, transform_indices = @transform_7, window_bounds = array<i64: 2, 1, 64>}, {pipeline_mode = #tpu.pipeline_mode<synchronous>, transform_indices = @transform_8, window_bounds = array<i64: 2, 64, 32>}, {pipeline_mode = #tpu.pipeline_mode<synchronous>, transform_indices = @transform_9, window_bounds = array<i64: 2, 6, 32>}, {pipeline_mode = #tpu.pipeline_mode<synchronous>, transform_indices = @transform_10, window_bounds = array<i64: 32, 128>}, {pipeline_mode = #tpu.pipeline_mode<synchronous>, transform_indices = @transform_11, window_bounds = array<i64: 1, 128>}, {transform_indices = @transform_12, window_bounds = array<i64: 1, 8, 128>}]} {
    %c0 = arith.constant 0 : index
    %c0_0 = arith.constant 0 : index
    %c0_1 = arith.constant 0 : index
    %0 = vector.load %arg2[%c0, %c0_0, %c0_1] : memref<1x1x8xf32, #tpu.memory_space<vmem>>, vector<1x1x8xf32>
    %1 = vector.shape_cast %0 : vector<1x1x8xf32> to vector<1x8xf32>
    %c0_2 = arith.constant 0 : index
    %c0_3 = arith.constant 0 : index
    %2 = vector.load %arg3[%c0_2, %c0_3] : memref<2x32xf32, #tpu.memory_space<vmem>>, vector<2x32xf32>
    %c0_4 = arith.constant 0 : index
    %c0_5 = arith.constant 0 : index
    %c0_6 = arith.constant 0 : index
    %3 = vector.load %arg1[%c0_4, %c0_5, %c0_6] : memref<1x8x32xf32, #tpu.memory_space<vmem>>, vector<1x8x32xf32>
    %4 = vector.shape_cast %3 : vector<1x8x32xf32> to vector<8x32xf32>
    %5 = vector.extract_strided_slice %2 {offsets = [0, 0], sizes = [1, 32], strides = [1, 1]} : vector<2x32xf32> to vector<1x32xf32>
    %6 = vector.shape_cast %5 : vector<1x32xf32> to vector<32xf32>
    %7 = vector.extract_strided_slice %2 {offsets = [1, 0], sizes = [1, 32], strides = [1, 1]} : vector<2x32xf32> to vector<1x32xf32>
    %8 = vector.shape_cast %7 : vector<1x32xf32> to vector<32xf32>
    %cst = arith.constant dense<0.000000e+00> : vector<8xf32>
    %9 = vector.multi_reduction <add>, %4, %cst [1] : vector<8x32xf32> to vector<8xf32>
    %10 = vector.shape_cast %9 : vector<8xf32> to vector<8x1xf32>
    %cst_7 = arith.constant 3.200000e+01 : f32
    %11 = vector.broadcast %cst_7 : f32 to vector<8x1xf32>
    %12 = arith.divf %10, %11 : vector<8x1xf32>
    %13 = vector.broadcast %12 : vector<8x1xf32> to vector<8x32xf32>
    %14 = arith.subf %4, %13 : vector<8x32xf32>
    %15 = arith.mulf %14, %14 : vector<8x32xf32>
    %cst_8 = arith.constant dense<0.000000e+00> : vector<8xf32>
    %16 = vector.multi_reduction <add>, %15, %cst_8 [1] : vector<8x32xf32> to vector<8xf32>
    %17 = vector.shape_cast %16 : vector<8xf32> to vector<8x1xf32>
    %cst_9 = arith.constant 3.200000e+01 : f32
    %18 = vector.broadcast %cst_9 : f32 to vector<8x1xf32>
    %19 = arith.divf %17, %18 : vector<8x1xf32>
    %20 = vector.broadcast %12 : vector<8x1xf32> to vector<8x32xf32>
    %21 = arith.subf %4, %20 : vector<8x32xf32>
    %cst_10 = arith.constant 9.99999996E-13 : f32
    %22 = vector.broadcast %cst_10 : f32 to vector<8x1xf32>
    %23 = arith.addf %19, %22 : vector<8x1xf32>
    %24 = math.rsqrt %23 : vector<8x1xf32>
    %25 = vector.broadcast %24 : vector<8x1xf32> to vector<8x32xf32>
    %26 = arith.mulf %21, %25 : vector<8x32xf32>
    %27 = vector.shape_cast %6 : vector<32xf32> to vector<1x32xf32>
    %28 = vector.broadcast %27 : vector<1x32xf32> to vector<8x32xf32>
    %29 = arith.mulf %26, %28 : vector<8x32xf32>
    %30 = vector.shape_cast %8 : vector<32xf32> to vector<1x32xf32>
    %31 = vector.broadcast %30 : vector<1x32xf32> to vector<8x32xf32>
    %32 = arith.addf %29, %31 : vector<8x32xf32>
    %c0_11 = arith.constant 0 : index
    %c0_12 = arith.constant 0 : index
    %c0_13 = arith.constant 0 : index
    %33 = vector.load %arg10[%c0_11, %c0_12, %c0_13] : memref<2x6x32xf32, #tpu.memory_space<vmem>>, vector<1x6x32xf32>
    %34 = vector.shape_cast %33 : vector<1x6x32xf32> to vector<6x32xf32>
    %35 = arith.truncf %32 : vector<8x32xf32> to vector<8x32xbf16>
    %c0_14 = arith.constant 0 : index
    %c0_15 = arith.constant 0 : index
    %c0_16 = arith.constant 0 : index
    %36 = vector.load %arg4[%c0_14, %c0_15, %c0_16] : memref<2x32x96xbf16, #tpu.memory_space<vmem>>, vector<1x32x96xbf16>
    %37 = vector.shape_cast %36 : vector<1x32x96xbf16> to vector<32x96xbf16>
    %cst_17 = arith.constant dense<0.000000e+00> : vector<8x96xf32>
    %38 = tpu.matmul %35, %37, %cst_17 {dimension_numbers = #tpu.dot_dimension_numbers<[1], [0], [0], [1], [0, 0, 1, 1], [], []>} : vector<8x32xbf16>, vector<32x96xbf16>, vector<8x96xf32> -> vector<8x96xf32>
    %c0_18 = arith.constant 0 : index
    %c0_19 = arith.constant 0 : index
    %c0_20 = arith.constant 0 : index
    %39 = vector.load %arg5[%c0_18, %c0_19, %c0_20] : memref<2x1x96xf32, #tpu.memory_space<vmem>>, vector<1x1x96xf32>
    %40 = vector.shape_cast %39 : vector<1x1x96xf32> to vector<1x96xf32>
    %41 = vector.broadcast %40 : vector<1x96xf32> to vector<8x96xf32>
    %42 = arith.addf %38, %41 : vector<8x96xf32>
    %43 = arith.truncf %42 : vector<8x96xf32> to vector<8x96xbf16>
    %44 = vector.extract_strided_slice %43 {offsets = [0, 0], sizes = [8, 16], strides = [1, 1]} : vector<8x96xbf16> to vector<8x16xbf16>
    %45 = vector.extract_strided_slice %43 {offsets = [0, 32], sizes = [8, 16], strides = [1, 1]} : vector<8x96xbf16> to vector<8x16xbf16>
    %46 = vector.extract_strided_slice %43 {offsets = [0, 64], sizes = [8, 16], strides = [1, 1]} : vector<8x96xbf16> to vector<8x16xbf16>
    %cst_21 = arith.constant dense<0.000000e+00> : vector<8x8xf32>
    %47 = tpu.matmul %44, %45, %cst_21 {dimension_numbers = #tpu.dot_dimension_numbers<[1], [1], [0], [0], [0, 0, 1, 0], [], []>} : vector<8x16xbf16>, vector<8x16xbf16>, vector<8x8xf32> -> vector<8x8xf32>
    %cst_22 = arith.constant 2.500000e-01 : f32
    %48 = vector.broadcast %cst_22 : f32 to vector<8x8xf32>
    %49 = arith.mulf %47, %48 : vector<8x8xf32>
    %50 = vector.broadcast %1 : vector<1x8xf32> to vector<8x8xf32>
    %51 = arith.addf %49, %50 : vector<8x8xf32>
    %cst_23 = arith.constant dense<0xFF800000> : vector<8xf32>
    %52 = vector.multi_reduction <maximumf>, %51, %cst_23 [1] : vector<8x8xf32> to vector<8xf32>
    %53 = vector.shape_cast %52 : vector<8xf32> to vector<8x1xf32>
    %54 = vector.broadcast %53 : vector<8x1xf32> to vector<8x8xf32>
    %55 = arith.subf %51, %54 : vector<8x8xf32>
    %56 = math.exp %55 : vector<8x8xf32>
    %cst_24 = arith.constant dense<0.000000e+00> : vector<8xf32>
    %57 = vector.multi_reduction <add>, %56, %cst_24 [1] : vector<8x8xf32> to vector<8xf32>
    %58 = vector.shape_cast %57 : vector<8xf32> to vector<8x1xf32>
    %59 = tpu.reciprocal %58 {approx = true} : vector<8x1xf32> -> vector<8x1xf32>
    %60 = vector.broadcast %59 : vector<8x1xf32> to vector<8x8xf32>
    %61 = arith.mulf %56, %60 : vector<8x8xf32>
    %62 = arith.truncf %61 : vector<8x8xf32> to vector<8x8xbf16>
    %cst_25 = arith.constant dense<0.000000e+00> : vector<8x16xf32>
    %63 = tpu.matmul %62, %46, %cst_25 {dimension_numbers = #tpu.dot_dimension_numbers<[1], [0], [0], [1], [0, 0, 1, 1], [], []>} : vector<8x8xbf16>, vector<8x16xbf16>, vector<8x16xf32> -> vector<8x16xf32>
    %64 = vector.extract_strided_slice %43 {offsets = [0, 16], sizes = [8, 16], strides = [1, 1]} : vector<8x96xbf16> to vector<8x16xbf16>
    %65 = vector.extract_strided_slice %43 {offsets = [0, 48], sizes = [8, 16], strides = [1, 1]} : vector<8x96xbf16> to vector<8x16xbf16>
    %66 = vector.extract_strided_slice %43 {offsets = [0, 80], sizes = [8, 16], strides = [1, 1]} : vector<8x96xbf16> to vector<8x16xbf16>
    %cst_26 = arith.constant dense<0.000000e+00> : vector<8x8xf32>
    %67 = tpu.matmul %64, %65, %cst_26 {dimension_numbers = #tpu.dot_dimension_numbers<[1], [1], [0], [0], [0, 0, 1, 0], [], []>} : vector<8x16xbf16>, vector<8x16xbf16>, vector<8x8xf32> -> vector<8x8xf32>
    %cst_27 = arith.constant 2.500000e-01 : f32
    %68 = vector.broadcast %cst_27 : f32 to vector<8x8xf32>
    %69 = arith.mulf %67, %68 : vector<8x8xf32>
    %70 = vector.broadcast %1 : vector<1x8xf32> to vector<8x8xf32>
    %71 = arith.addf %69, %70 : vector<8x8xf32>
    %cst_28 = arith.constant dense<0xFF800000> : vector<8xf32>
    %72 = vector.multi_reduction <maximumf>, %71, %cst_28 [1] : vector<8x8xf32> to vector<8xf32>
    %73 = vector.shape_cast %72 : vector<8xf32> to vector<8x1xf32>
    %74 = vector.broadcast %73 : vector<8x1xf32> to vector<8x8xf32>
    %75 = arith.subf %71, %74 : vector<8x8xf32>
    %76 = math.exp %75 : vector<8x8xf32>
    %cst_29 = arith.constant dense<0.000000e+00> : vector<8xf32>
    %77 = vector.multi_reduction <add>, %76, %cst_29 [1] : vector<8x8xf32> to vector<8xf32>
    %78 = vector.shape_cast %77 : vector<8xf32> to vector<8x1xf32>
    %79 = tpu.reciprocal %78 {approx = true} : vector<8x1xf32> -> vector<8x1xf32>
    %80 = vector.broadcast %79 : vector<8x1xf32> to vector<8x8xf32>
    %81 = arith.mulf %76, %80 : vector<8x8xf32>
    %82 = arith.truncf %81 : vector<8x8xf32> to vector<8x8xbf16>
    %cst_30 = arith.constant dense<0.000000e+00> : vector<8x16xf32>
    %83 = tpu.matmul %82, %66, %cst_30 {dimension_numbers = #tpu.dot_dimension_numbers<[1], [0], [0], [1], [0, 0, 1, 1], [], []>} : vector<8x8xbf16>, vector<8x16xbf16>, vector<8x16xf32> -> vector<8x16xf32>
    %84 = tpu.concatenate %63, %83 in 1 : vector<8x16xf32>, vector<8x16xf32> -> vector<8x32xf32>
    %85 = arith.truncf %84 : vector<8x32xf32> to vector<8x32xbf16>
    %c0_31 = arith.constant 0 : index
    %c0_32 = arith.constant 0 : index
    %c0_33 = arith.constant 0 : index
    %86 = vector.load %arg6[%c0_31, %c0_32, %c0_33] : memref<2x32x32xbf16, #tpu.memory_space<vmem>>, vector<1x32x32xbf16>
    %87 = vector.shape_cast %86 : vector<1x32x32xbf16> to vector<32x32xbf16>
    %cst_34 = arith.constant dense<0.000000e+00> : vector<8x32xf32>
    %88 = tpu.matmul %85, %87, %cst_34 {dimension_numbers = #tpu.dot_dimension_numbers<[1], [0], [0], [1], [0, 0, 1, 1], [], []>} : vector<8x32xbf16>, vector<32x32xbf16>, vector<8x32xf32> -> vector<8x32xf32>
    %89 = vector.extract_strided_slice %34 {offsets = [0, 0], sizes = [1, 32], strides = [1, 1]} : vector<6x32xf32> to vector<1x32xf32>
    %90 = vector.shape_cast %89 : vector<1x32xf32> to vector<32xf32>
    %91 = vector.shape_cast %90 : vector<32xf32> to vector<1x32xf32>
    %92 = vector.broadcast %91 : vector<1x32xf32> to vector<8x32xf32>
    %93 = arith.addf %88, %92 : vector<8x32xf32>
    %94 = arith.addf %93, %32 : vector<8x32xf32>
    %95 = vector.extract_strided_slice %34 {offsets = [1, 0], sizes = [1, 32], strides = [1, 1]} : vector<6x32xf32> to vector<1x32xf32>
    %96 = vector.shape_cast %95 : vector<1x32xf32> to vector<32xf32>
    %97 = vector.extract_strided_slice %34 {offsets = [2, 0], sizes = [1, 32], strides = [1, 1]} : vector<6x32xf32> to vector<1x32xf32>
    %98 = vector.shape_cast %97 : vector<1x32xf32> to vector<32xf32>
    %cst_35 = arith.constant dense<0.000000e+00> : vector<8xf32>
    %99 = vector.multi_reduction <add>, %94, %cst_35 [1] : vector<8x32xf32> to vector<8xf32>
    %100 = vector.shape_cast %99 : vector<8xf32> to vector<8x1xf32>
    %cst_36 = arith.constant 3.200000e+01 : f32
    %101 = vector.broadcast %cst_36 : f32 to vector<8x1xf32>
    %102 = arith.divf %100, %101 : vector<8x1xf32>
    %103 = vector.broadcast %102 : vector<8x1xf32> to vector<8x32xf32>
    %104 = arith.subf %94, %103 : vector<8x32xf32>
    %105 = arith.mulf %104, %104 : vector<8x32xf32>
    %cst_37 = arith.constant dense<0.000000e+00> : vector<8xf32>
    %106 = vector.multi_reduction <add>, %105, %cst_37 [1] : vector<8x32xf32> to vector<8xf32>
    %107 = vector.shape_cast %106 : vector<8xf32> to vector<8x1xf32>
    %cst_38 = arith.constant 3.200000e+01 : f32
    %108 = vector.broadcast %cst_38 : f32 to vector<8x1xf32>
    %109 = arith.divf %107, %108 : vector<8x1xf32>
    %110 = vector.broadcast %102 : vector<8x1xf32> to vector<8x32xf32>
    %111 = arith.subf %94, %110 : vector<8x32xf32>
    %cst_39 = arith.constant 9.99999996E-13 : f32
    %112 = vector.broadcast %cst_39 : f32 to vector<8x1xf32>
    %113 = arith.addf %109, %112 : vector<8x1xf32>
    %114 = math.rsqrt %113 : vector<8x1xf32>
    %115 = vector.broadcast %114 : vector<8x1xf32> to vector<8x32xf32>
    %116 = arith.mulf %111, %115 : vector<8x32xf32>
    %117 = vector.shape_cast %96 : vector<32xf32> to vector<1x32xf32>
    %118 = vector.broadcast %117 : vector<1x32xf32> to vector<8x32xf32>
    %119 = arith.mulf %116, %118 : vector<8x32xf32>
    %120 = vector.shape_cast %98 : vector<32xf32> to vector<1x32xf32>
    %121 = vector.broadcast %120 : vector<1x32xf32> to vector<8x32xf32>
    %122 = arith.addf %119, %121 : vector<8x32xf32>
    %123 = arith.truncf %122 : vector<8x32xf32> to vector<8x32xbf16>
    %c0_40 = arith.constant 0 : index
    %c0_41 = arith.constant 0 : index
    %c0_42 = arith.constant 0 : index
    %124 = vector.load %arg7[%c0_40, %c0_41, %c0_42] : memref<2x32x64xbf16, #tpu.memory_space<vmem>>, vector<1x32x64xbf16>
    %125 = vector.shape_cast %124 : vector<1x32x64xbf16> to vector<32x64xbf16>
    %cst_43 = arith.constant dense<0.000000e+00> : vector<8x64xf32>
    %126 = tpu.matmul %123, %125, %cst_43 {dimension_numbers = #tpu.dot_dimension_numbers<[1], [0], [0], [1], [0, 0, 1, 1], [], []>} : vector<8x32xbf16>, vector<32x64xbf16>, vector<8x64xf32> -> vector<8x64xf32>
    %c0_44 = arith.constant 0 : index
    %c0_45 = arith.constant 0 : index
    %c0_46 = arith.constant 0 : index
    %127 = vector.load %arg8[%c0_44, %c0_45, %c0_46] : memref<2x1x64xf32, #tpu.memory_space<vmem>>, vector<1x1x64xf32>
    %128 = vector.shape_cast %127 : vector<1x1x64xf32> to vector<1x64xf32>
    %129 = vector.broadcast %128 : vector<1x64xf32> to vector<8x64xf32>
    %130 = arith.addf %126, %129 : vector<8x64xf32>
    %131 = arith.mulf %130, %130 : vector<8x64xf32>
    %132 = arith.mulf %130, %131 : vector<8x64xf32>
    %cst_47 = arith.constant 4.471500e-02 : f32
    %133 = vector.broadcast %cst_47 : f32 to vector<8x64xf32>
    %134 = arith.mulf %133, %132 : vector<8x64xf32>
    %135 = arith.addf %130, %134 : vector<8x64xf32>
    %cst_48 = arith.constant 0.797884583 : f32
    %136 = vector.broadcast %cst_48 : f32 to vector<8x64xf32>
    %137 = arith.mulf %136, %135 : vector<8x64xf32>
    %138 = math.tanh %137 : vector<8x64xf32>
    %cst_49 = arith.constant 1.000000e+00 : f32
    %139 = vector.broadcast %cst_49 : f32 to vector<8x64xf32>
    %140 = arith.addf %139, %138 : vector<8x64xf32>
    %cst_50 = arith.constant 5.000000e-01 : f32
    %141 = vector.broadcast %cst_50 : f32 to vector<8x64xf32>
    %142 = arith.mulf %141, %140 : vector<8x64xf32>
    %143 = arith.mulf %130, %142 : vector<8x64xf32>
    %144 = arith.truncf %143 : vector<8x64xf32> to vector<8x64xbf16>
    %c0_51 = arith.constant 0 : index
    %c0_52 = arith.constant 0 : index
    %c0_53 = arith.constant 0 : index
    %145 = vector.load %arg9[%c0_51, %c0_52, %c0_53] : memref<2x64x32xbf16, #tpu.memory_space<vmem>>, vector<1x64x32xbf16>
    %146 = vector.shape_cast %145 : vector<1x64x32xbf16> to vector<64x32xbf16>
    %cst_54 = arith.constant dense<0.000000e+00> : vector<8x32xf32>
    %147 = tpu.matmul %144, %146, %cst_54 {dimension_numbers = #tpu.dot_dimension_numbers<[1], [0], [0], [1], [0, 0, 1, 1], [], []>} : vector<8x64xbf16>, vector<64x32xbf16>, vector<8x32xf32> -> vector<8x32xf32>
    %148 = vector.extract_strided_slice %34 {offsets = [3, 0], sizes = [1, 32], strides = [1, 1]} : vector<6x32xf32> to vector<1x32xf32>
    %149 = vector.shape_cast %148 : vector<1x32xf32> to vector<32xf32>
    %150 = vector.shape_cast %149 : vector<32xf32> to vector<1x32xf32>
    %151 = vector.broadcast %150 : vector<1x32xf32> to vector<8x32xf32>
    %152 = arith.addf %147, %151 : vector<8x32xf32>
    %153 = arith.addf %152, %122 : vector<8x32xf32>
    %154 = vector.extract_strided_slice %34 {offsets = [4, 0], sizes = [1, 32], strides = [1, 1]} : vector<6x32xf32> to vector<1x32xf32>
    %155 = vector.shape_cast %154 : vector<1x32xf32> to vector<32xf32>
    %156 = vector.extract_strided_slice %34 {offsets = [5, 0], sizes = [1, 32], strides = [1, 1]} : vector<6x32xf32> to vector<1x32xf32>
    %157 = vector.shape_cast %156 : vector<1x32xf32> to vector<32xf32>
    %cst_55 = arith.constant dense<0.000000e+00> : vector<8xf32>
    %158 = vector.multi_reduction <add>, %153, %cst_55 [1] : vector<8x32xf32> to vector<8xf32>
    %159 = vector.shape_cast %158 : vector<8xf32> to vector<8x1xf32>
    %cst_56 = arith.constant 3.200000e+01 : f32
    %160 = vector.broadcast %cst_56 : f32 to vector<8x1xf32>
    %161 = arith.divf %159, %160 : vector<8x1xf32>
    %162 = vector.broadcast %161 : vector<8x1xf32> to vector<8x32xf32>
    %163 = arith.subf %153, %162 : vector<8x32xf32>
    %164 = arith.mulf %163, %163 : vector<8x32xf32>
    %cst_57 = arith.constant dense<0.000000e+00> : vector<8xf32>
    %165 = vector.multi_reduction <add>, %164, %cst_57 [1] : vector<8x32xf32> to vector<8xf32>
    %166 = vector.shape_cast %165 : vector<8xf32> to vector<8x1xf32>
    %cst_58 = arith.constant 3.200000e+01 : f32
    %167 = vector.broadcast %cst_58 : f32 to vector<8x1xf32>
    %168 = arith.divf %166, %167 : vector<8x1xf32>
    %169 = vector.broadcast %161 : vector<8x1xf32> to vector<8x32xf32>
    %170 = arith.subf %153, %169 : vector<8x32xf32>
    %cst_59 = arith.constant 9.99999996E-13 : f32
    %171 = vector.broadcast %cst_59 : f32 to vector<8x1xf32>
    %172 = arith.addf %168, %171 : vector<8x1xf32>
    %173 = math.rsqrt %172 : vector<8x1xf32>
    %174 = vector.broadcast %173 : vector<8x1xf32> to vector<8x32xf32>
    %175 = arith.mulf %170, %174 : vector<8x32xf32>
    %176 = vector.shape_cast %155 : vector<32xf32> to vector<1x32xf32>
    %177 = vector.broadcast %176 : vector<1x32xf32> to vector<8x32xf32>
    %178 = arith.mulf %175, %177 : vector<8x32xf32>
    %179 = vector.shape_cast %157 : vector<32xf32> to vector<1x32xf32>
    %180 = vector.broadcast %179 : vector<1x32xf32> to vector<8x32xf32>
    %181 = arith.addf %178, %180 : vector<8x32xf32>
    %c1 = arith.constant 1 : index
    %c0_60 = arith.constant 0 : index
    %c0_61 = arith.constant 0 : index
    %182 = vector.load %arg10[%c1, %c0_60, %c0_61] : memref<2x6x32xf32, #tpu.memory_space<vmem>>, vector<1x6x32xf32>
    %183 = vector.shape_cast %182 : vector<1x6x32xf32> to vector<6x32xf32>
    %184 = arith.truncf %181 : vector<8x32xf32> to vector<8x32xbf16>
    %c1_62 = arith.constant 1 : index
    %c0_63 = arith.constant 0 : index
    %c0_64 = arith.constant 0 : index
    %185 = vector.load %arg4[%c1_62, %c0_63, %c0_64] : memref<2x32x96xbf16, #tpu.memory_space<vmem>>, vector<1x32x96xbf16>
    %186 = vector.shape_cast %185 : vector<1x32x96xbf16> to vector<32x96xbf16>
    %cst_65 = arith.constant dense<0.000000e+00> : vector<8x96xf32>
    %187 = tpu.matmul %184, %186, %cst_65 {dimension_numbers = #tpu.dot_dimension_numbers<[1], [0], [0], [1], [0, 0, 1, 1], [], []>} : vector<8x32xbf16>, vector<32x96xbf16>, vector<8x96xf32> -> vector<8x96xf32>
    %c1_66 = arith.constant 1 : index
    %c0_67 = arith.constant 0 : index
    %c0_68 = arith.constant 0 : index
    %188 = vector.load %arg5[%c1_66, %c0_67, %c0_68] : memref<2x1x96xf32, #tpu.memory_space<vmem>>, vector<1x1x96xf32>
    %189 = vector.shape_cast %188 : vector<1x1x96xf32> to vector<1x96xf32>
    %190 = vector.broadcast %189 : vector<1x96xf32> to vector<8x96xf32>
    %191 = arith.addf %187, %190 : vector<8x96xf32>
    %192 = arith.truncf %191 : vector<8x96xf32> to vector<8x96xbf16>
    %193 = vector.extract_strided_slice %192 {offsets = [0, 0], sizes = [8, 16], strides = [1, 1]} : vector<8x96xbf16> to vector<8x16xbf16>
    %194 = vector.extract_strided_slice %192 {offsets = [0, 32], sizes = [8, 16], strides = [1, 1]} : vector<8x96xbf16> to vector<8x16xbf16>
    %195 = vector.extract_strided_slice %192 {offsets = [0, 64], sizes = [8, 16], strides = [1, 1]} : vector<8x96xbf16> to vector<8x16xbf16>
    %cst_69 = arith.constant dense<0.000000e+00> : vector<8x8xf32>
    %196 = tpu.matmul %193, %194, %cst_69 {dimension_numbers = #tpu.dot_dimension_numbers<[1], [1], [0], [0], [0, 0, 1, 0], [], []>} : vector<8x16xbf16>, vector<8x16xbf16>, vector<8x8xf32> -> vector<8x8xf32>
    %cst_70 = arith.constant 2.500000e-01 : f32
    %197 = vector.broadcast %cst_70 : f32 to vector<8x8xf32>
    %198 = arith.mulf %196, %197 : vector<8x8xf32>
    %199 = vector.broadcast %1 : vector<1x8xf32> to vector<8x8xf32>
    %200 = arith.addf %198, %199 : vector<8x8xf32>
    %cst_71 = arith.constant dense<0xFF800000> : vector<8xf32>
    %201 = vector.multi_reduction <maximumf>, %200, %cst_71 [1] : vector<8x8xf32> to vector<8xf32>
    %202 = vector.shape_cast %201 : vector<8xf32> to vector<8x1xf32>
    %203 = vector.broadcast %202 : vector<8x1xf32> to vector<8x8xf32>
    %204 = arith.subf %200, %203 : vector<8x8xf32>
    %205 = math.exp %204 : vector<8x8xf32>
    %cst_72 = arith.constant dense<0.000000e+00> : vector<8xf32>
    %206 = vector.multi_reduction <add>, %205, %cst_72 [1] : vector<8x8xf32> to vector<8xf32>
    %207 = vector.shape_cast %206 : vector<8xf32> to vector<8x1xf32>
    %208 = tpu.reciprocal %207 {approx = true} : vector<8x1xf32> -> vector<8x1xf32>
    %209 = vector.broadcast %208 : vector<8x1xf32> to vector<8x8xf32>
    %210 = arith.mulf %205, %209 : vector<8x8xf32>
    %211 = arith.truncf %210 : vector<8x8xf32> to vector<8x8xbf16>
    %cst_73 = arith.constant dense<0.000000e+00> : vector<8x16xf32>
    %212 = tpu.matmul %211, %195, %cst_73 {dimension_numbers = #tpu.dot_dimension_numbers<[1], [0], [0], [1], [0, 0, 1, 1], [], []>} : vector<8x8xbf16>, vector<8x16xbf16>, vector<8x16xf32> -> vector<8x16xf32>
    %213 = vector.extract_strided_slice %192 {offsets = [0, 16], sizes = [8, 16], strides = [1, 1]} : vector<8x96xbf16> to vector<8x16xbf16>
    %214 = vector.extract_strided_slice %192 {offsets = [0, 48], sizes = [8, 16], strides = [1, 1]} : vector<8x96xbf16> to vector<8x16xbf16>
    %215 = vector.extract_strided_slice %192 {offsets = [0, 80], sizes = [8, 16], strides = [1, 1]} : vector<8x96xbf16> to vector<8x16xbf16>
    %cst_74 = arith.constant dense<0.000000e+00> : vector<8x8xf32>
    %216 = tpu.matmul %213, %214, %cst_74 {dimension_numbers = #tpu.dot_dimension_numbers<[1], [1], [0], [0], [0, 0, 1, 0], [], []>} : vector<8x16xbf16>, vector<8x16xbf16>, vector<8x8xf32> -> vector<8x8xf32>
    %cst_75 = arith.constant 2.500000e-01 : f32
    %217 = vector.broadcast %cst_75 : f32 to vector<8x8xf32>
    %218 = arith.mulf %216, %217 : vector<8x8xf32>
    %219 = vector.broadcast %1 : vector<1x8xf32> to vector<8x8xf32>
    %220 = arith.addf %218, %219 : vector<8x8xf32>
    %cst_76 = arith.constant dense<0xFF800000> : vector<8xf32>
    %221 = vector.multi_reduction <maximumf>, %220, %cst_76 [1] : vector<8x8xf32> to vector<8xf32>
    %222 = vector.shape_cast %221 : vector<8xf32> to vector<8x1xf32>
    %223 = vector.broadcast %222 : vector<8x1xf32> to vector<8x8xf32>
    %224 = arith.subf %220, %223 : vector<8x8xf32>
    %225 = math.exp %224 : vector<8x8xf32>
    %cst_77 = arith.constant dense<0.000000e+00> : vector<8xf32>
    %226 = vector.multi_reduction <add>, %225, %cst_77 [1] : vector<8x8xf32> to vector<8xf32>
    %227 = vector.shape_cast %226 : vector<8xf32> to vector<8x1xf32>
    %228 = tpu.reciprocal %227 {approx = true} : vector<8x1xf32> -> vector<8x1xf32>
    %229 = vector.broadcast %228 : vector<8x1xf32> to vector<8x8xf32>
    %230 = arith.mulf %225, %229 : vector<8x8xf32>
    %231 = arith.truncf %230 : vector<8x8xf32> to vector<8x8xbf16>
    %cst_78 = arith.constant dense<0.000000e+00> : vector<8x16xf32>
    %232 = tpu.matmul %231, %215, %cst_78 {dimension_numbers = #tpu.dot_dimension_numbers<[1], [0], [0], [1], [0, 0, 1, 1], [], []>} : vector<8x8xbf16>, vector<8x16xbf16>, vector<8x16xf32> -> vector<8x16xf32>
    %233 = tpu.concatenate %212, %232 in 1 : vector<8x16xf32>, vector<8x16xf32> -> vector<8x32xf32>
    %234 = arith.truncf %233 : vector<8x32xf32> to vector<8x32xbf16>
    %c1_79 = arith.constant 1 : index
    %c0_80 = arith.constant 0 : index
    %c0_81 = arith.constant 0 : index
    %235 = vector.load %arg6[%c1_79, %c0_80, %c0_81] : memref<2x32x32xbf16, #tpu.memory_space<vmem>>, vector<1x32x32xbf16>
    %236 = vector.shape_cast %235 : vector<1x32x32xbf16> to vector<32x32xbf16>
    %cst_82 = arith.constant dense<0.000000e+00> : vector<8x32xf32>
    %237 = tpu.matmul %234, %236, %cst_82 {dimension_numbers = #tpu.dot_dimension_numbers<[1], [0], [0], [1], [0, 0, 1, 1], [], []>} : vector<8x32xbf16>, vector<32x32xbf16>, vector<8x32xf32> -> vector<8x32xf32>
    %238 = vector.extract_strided_slice %183 {offsets = [0, 0], sizes = [1, 32], strides = [1, 1]} : vector<6x32xf32> to vector<1x32xf32>
    %239 = vector.shape_cast %238 : vector<1x32xf32> to vector<32xf32>
    %240 = vector.shape_cast %239 : vector<32xf32> to vector<1x32xf32>
    %241 = vector.broadcast %240 : vector<1x32xf32> to vector<8x32xf32>
    %242 = arith.addf %237, %241 : vector<8x32xf32>
    %243 = arith.addf %242, %181 : vector<8x32xf32>
    %244 = vector.extract_strided_slice %183 {offsets = [1, 0], sizes = [1, 32], strides = [1, 1]} : vector<6x32xf32> to vector<1x32xf32>
    %245 = vector.shape_cast %244 : vector<1x32xf32> to vector<32xf32>
    %246 = vector.extract_strided_slice %183 {offsets = [2, 0], sizes = [1, 32], strides = [1, 1]} : vector<6x32xf32> to vector<1x32xf32>
    %247 = vector.shape_cast %246 : vector<1x32xf32> to vector<32xf32>
    %cst_83 = arith.constant dense<0.000000e+00> : vector<8xf32>
    %248 = vector.multi_reduction <add>, %243, %cst_83 [1] : vector<8x32xf32> to vector<8xf32>
    %249 = vector.shape_cast %248 : vector<8xf32> to vector<8x1xf32>
    %cst_84 = arith.constant 3.200000e+01 : f32
    %250 = vector.broadcast %cst_84 : f32 to vector<8x1xf32>
    %251 = arith.divf %249, %250 : vector<8x1xf32>
    %252 = vector.broadcast %251 : vector<8x1xf32> to vector<8x32xf32>
    %253 = arith.subf %243, %252 : vector<8x32xf32>
    %254 = arith.mulf %253, %253 : vector<8x32xf32>
    %cst_85 = arith.constant dense<0.000000e+00> : vector<8xf32>
    %255 = vector.multi_reduction <add>, %254, %cst_85 [1] : vector<8x32xf32> to vector<8xf32>
    %256 = vector.shape_cast %255 : vector<8xf32> to vector<8x1xf32>
    %cst_86 = arith.constant 3.200000e+01 : f32
    %257 = vector.broadcast %cst_86 : f32 to vector<8x1xf32>
    %258 = arith.divf %256, %257 : vector<8x1xf32>
    %259 = vector.broadcast %251 : vector<8x1xf32> to vector<8x32xf32>
    %260 = arith.subf %243, %259 : vector<8x32xf32>
    %cst_87 = arith.constant 9.99999996E-13 : f32
    %261 = vector.broadcast %cst_87 : f32 to vector<8x1xf32>
    %262 = arith.addf %258, %261 : vector<8x1xf32>
    %263 = math.rsqrt %262 : vector<8x1xf32>
    %264 = vector.broadcast %263 : vector<8x1xf32> to vector<8x32xf32>
    %265 = arith.mulf %260, %264 : vector<8x32xf32>
    %266 = vector.shape_cast %245 : vector<32xf32> to vector<1x32xf32>
    %267 = vector.broadcast %266 : vector<1x32xf32> to vector<8x32xf32>
    %268 = arith.mulf %265, %267 : vector<8x32xf32>
    %269 = vector.shape_cast %247 : vector<32xf32> to vector<1x32xf32>
    %270 = vector.broadcast %269 : vector<1x32xf32> to vector<8x32xf32>
    %271 = arith.addf %268, %270 : vector<8x32xf32>
    %272 = arith.truncf %271 : vector<8x32xf32> to vector<8x32xbf16>
    %c1_88 = arith.constant 1 : index
    %c0_89 = arith.constant 0 : index
    %c0_90 = arith.constant 0 : index
    %273 = vector.load %arg7[%c1_88, %c0_89, %c0_90] : memref<2x32x64xbf16, #tpu.memory_space<vmem>>, vector<1x32x64xbf16>
    %274 = vector.shape_cast %273 : vector<1x32x64xbf16> to vector<32x64xbf16>
    %cst_91 = arith.constant dense<0.000000e+00> : vector<8x64xf32>
    %275 = tpu.matmul %272, %274, %cst_91 {dimension_numbers = #tpu.dot_dimension_numbers<[1], [0], [0], [1], [0, 0, 1, 1], [], []>} : vector<8x32xbf16>, vector<32x64xbf16>, vector<8x64xf32> -> vector<8x64xf32>
    %c1_92 = arith.constant 1 : index
    %c0_93 = arith.constant 0 : index
    %c0_94 = arith.constant 0 : index
    %276 = vector.load %arg8[%c1_92, %c0_93, %c0_94] : memref<2x1x64xf32, #tpu.memory_space<vmem>>, vector<1x1x64xf32>
    %277 = vector.shape_cast %276 : vector<1x1x64xf32> to vector<1x64xf32>
    %278 = vector.broadcast %277 : vector<1x64xf32> to vector<8x64xf32>
    %279 = arith.addf %275, %278 : vector<8x64xf32>
    %280 = arith.mulf %279, %279 : vector<8x64xf32>
    %281 = arith.mulf %279, %280 : vector<8x64xf32>
    %cst_95 = arith.constant 4.471500e-02 : f32
    %282 = vector.broadcast %cst_95 : f32 to vector<8x64xf32>
    %283 = arith.mulf %282, %281 : vector<8x64xf32>
    %284 = arith.addf %279, %283 : vector<8x64xf32>
    %cst_96 = arith.constant 0.797884583 : f32
    %285 = vector.broadcast %cst_96 : f32 to vector<8x64xf32>
    %286 = arith.mulf %285, %284 : vector<8x64xf32>
    %287 = math.tanh %286 : vector<8x64xf32>
    %cst_97 = arith.constant 1.000000e+00 : f32
    %288 = vector.broadcast %cst_97 : f32 to vector<8x64xf32>
    %289 = arith.addf %288, %287 : vector<8x64xf32>
    %cst_98 = arith.constant 5.000000e-01 : f32
    %290 = vector.broadcast %cst_98 : f32 to vector<8x64xf32>
    %291 = arith.mulf %290, %289 : vector<8x64xf32>
    %292 = arith.mulf %279, %291 : vector<8x64xf32>
    %293 = arith.truncf %292 : vector<8x64xf32> to vector<8x64xbf16>
    %c1_99 = arith.constant 1 : index
    %c0_100 = arith.constant 0 : index
    %c0_101 = arith.constant 0 : index
    %294 = vector.load %arg9[%c1_99, %c0_100, %c0_101] : memref<2x64x32xbf16, #tpu.memory_space<vmem>>, vector<1x64x32xbf16>
    %295 = vector.shape_cast %294 : vector<1x64x32xbf16> to vector<64x32xbf16>
    %cst_102 = arith.constant dense<0.000000e+00> : vector<8x32xf32>
    %296 = tpu.matmul %293, %295, %cst_102 {dimension_numbers = #tpu.dot_dimension_numbers<[1], [0], [0], [1], [0, 0, 1, 1], [], []>} : vector<8x64xbf16>, vector<64x32xbf16>, vector<8x32xf32> -> vector<8x32xf32>
    %297 = vector.extract_strided_slice %183 {offsets = [3, 0], sizes = [1, 32], strides = [1, 1]} : vector<6x32xf32> to vector<1x32xf32>
    %298 = vector.shape_cast %297 : vector<1x32xf32> to vector<32xf32>
    %299 = vector.shape_cast %298 : vector<32xf32> to vector<1x32xf32>
    %300 = vector.broadcast %299 : vector<1x32xf32> to vector<8x32xf32>
    %301 = arith.addf %296, %300 : vector<8x32xf32>
    %302 = arith.addf %301, %271 : vector<8x32xf32>
    %303 = vector.extract_strided_slice %183 {offsets = [4, 0], sizes = [1, 32], strides = [1, 1]} : vector<6x32xf32> to vector<1x32xf32>
    %304 = vector.shape_cast %303 : vector<1x32xf32> to vector<32xf32>
    %305 = vector.extract_strided_slice %183 {offsets = [5, 0], sizes = [1, 32], strides = [1, 1]} : vector<6x32xf32> to vector<1x32xf32>
    %306 = vector.shape_cast %305 : vector<1x32xf32> to vector<32xf32>
    %cst_103 = arith.constant dense<0.000000e+00> : vector<8xf32>
    %307 = vector.multi_reduction <add>, %302, %cst_103 [1] : vector<8x32xf32> to vector<8xf32>
    %308 = vector.shape_cast %307 : vector<8xf32> to vector<8x1xf32>
    %cst_104 = arith.constant 3.200000e+01 : f32
    %309 = vector.broadcast %cst_104 : f32 to vector<8x1xf32>
    %310 = arith.divf %308, %309 : vector<8x1xf32>
    %311 = vector.broadcast %310 : vector<8x1xf32> to vector<8x32xf32>
    %312 = arith.subf %302, %311 : vector<8x32xf32>
    %313 = arith.mulf %312, %312 : vector<8x32xf32>
    %cst_105 = arith.constant dense<0.000000e+00> : vector<8xf32>
    %314 = vector.multi_reduction <add>, %313, %cst_105 [1] : vector<8x32xf32> to vector<8xf32>
    %315 = vector.shape_cast %314 : vector<8xf32> to vector<8x1xf32>
    %cst_106 = arith.constant 3.200000e+01 : f32
    %316 = vector.broadcast %cst_106 : f32 to vector<8x1xf32>
    %317 = arith.divf %315, %316 : vector<8x1xf32>
    %318 = vector.broadcast %310 : vector<8x1xf32> to vector<8x32xf32>
    %319 = arith.subf %302, %318 : vector<8x32xf32>
    %cst_107 = arith.constant 9.99999996E-13 : f32
    %320 = vector.broadcast %cst_107 : f32 to vector<8x1xf32>
    %321 = arith.addf %317, %320 : vector<8x1xf32>
    %322 = math.rsqrt %321 : vector<8x1xf32>
    %323 = vector.broadcast %322 : vector<8x1xf32> to vector<8x32xf32>
    %324 = arith.mulf %319, %323 : vector<8x32xf32>
    %325 = vector.shape_cast %304 : vector<32xf32> to vector<1x32xf32>
    %326 = vector.broadcast %325 : vector<1x32xf32> to vector<8x32xf32>
    %327 = arith.mulf %324, %326 : vector<8x32xf32>
    %328 = vector.shape_cast %306 : vector<32xf32> to vector<1x32xf32>
    %329 = vector.broadcast %328 : vector<1x32xf32> to vector<8x32xf32>
    %330 = arith.addf %327, %329 : vector<8x32xf32>
    %331 = arith.truncf %330 : vector<8x32xf32> to vector<8x32xbf16>
    %c0_108 = arith.constant 0 : index
    %c0_109 = arith.constant 0 : index
    %332 = vector.load %arg11[%c0_108, %c0_109] : memref<32x128xbf16, #tpu.memory_space<vmem>>, vector<32x128xbf16>
    %cst_110 = arith.constant dense<0.000000e+00> : vector<8x128xf32>
    %333 = tpu.matmul %331, %332, %cst_110 {dimension_numbers = #tpu.dot_dimension_numbers<[1], [0], [0], [1], [0, 0, 1, 1], [], []>} : vector<8x32xbf16>, vector<32x128xbf16>, vector<8x128xf32> -> vector<8x128xf32>
    %c0_111 = arith.constant 0 : index
    %c0_112 = arith.constant 0 : index
    %334 = vector.load %arg12[%c0_111, %c0_112] : memref<1x128xf32, #tpu.memory_space<vmem>>, vector<1x128xf32>
    %335 = vector.broadcast %334 : vector<1x128xf32> to vector<8x128xf32>
    %336 = arith.addf %333, %335 : vector<8x128xf32>
    %cst_113 = arith.constant dense<0xFF800000> : vector<8xf32>
    %337 = vector.multi_reduction <maximumf>, %336, %cst_113 [1] : vector<8x128xf32> to vector<8xf32>
    %338 = vector.shape_cast %337 : vector<8xf32> to vector<8x1xf32>
    %339 = vector.broadcast %338 : vector<8x1xf32> to vector<8x128xf32>
    %340 = arith.subf %336, %339 : vector<8x128xf32>
    %341 = math.exp %340 : vector<8x128xf32>
    %cst_114 = arith.constant dense<0.000000e+00> : vector<8xf32>
    %342 = vector.multi_reduction <add>, %341, %cst_114 [1] : vector<8x128xf32> to vector<8xf32>
    %343 = vector.shape_cast %342 : vector<8xf32> to vector<8x1xf32>
    %344 = vector.broadcast %343 : vector<8x1xf32> to vector<8x128xf32>
    %345 = arith.divf %341, %344 : vector<8x128xf32>
    %c0_115 = arith.constant 0 : index
    %c0_116 = arith.constant 0 : index
    %c0_117 = arith.constant 0 : index
    %346 = vector.load %arg13[%c0_115, %c0_116, %c0_117] : memref<1x8x128xf32, #tpu.memory_space<vmem>>, vector<1x8x128xf32>
    %347 = vector.shape_cast %346 : vector<1x8x128xf32> to vector<8x128xf32>
    %348 = vector.shape_cast %345 : vector<8x128xf32> to vector<1x8x128xf32>
    tpu.vector_store %arg13[%c0_115, %c0_116, %c0_117], %348 {strides = array<i32>} : memref<1x8x128xf32, #tpu.memory_space<vmem>>, vector<1x8x128xf32>,
    return
  }
  func.func @transform_0(%arg0: i32) -> (i32, i32, i32) {
    %c0_i32 = arith.constant 0 : i32
    %c0_i32_0 = arith.constant 0 : i32
    %c0_i32_1 = arith.constant 0 : i32
    return %arg0, %c0_i32, %c0_i32_0 : i32, i32, i32
  }
  func.func @transform_1(%arg0: i32) -> (i32, i32, i32) {
    %c0_i32 = arith.constant 0 : i32
    %c0_i32_0 = arith.constant 0 : i32
    %c0_i32_1 = arith.constant 0 : i32
    return %arg0, %c0_i32, %c0_i32_0 : i32, i32, i32
  }
  func.func @transform_2(%arg0: i32) -> (i32, i32) {
    %c0_i32 = arith.constant 0 : i32
    %c0_i32_0 = arith.constant 0 : i32
    %c0_i32_1 = arith.constant 0 : i32
    return %c0_i32, %c0_i32_0 : i32, i32
  }
  func.func @transform_3(%arg0: i32) -> (i32, i32, i32) {
    %c0_i32 = arith.constant 0 : i32
    %c0_i32_0 = arith.constant 0 : i32
    %c0_i32_1 = arith.constant 0 : i32
    %c0_i32_2 = arith.constant 0 : i32
    return %c0_i32, %c0_i32_0, %c0_i32_1 : i32, i32, i32
  }
  func.func @transform_4(%arg0: i32) -> (i32, i32, i32) {
    %c0_i32 = arith.constant 0 : i32
    %c0_i32_0 = arith.constant 0 : i32
    %c0_i32_1 = arith.constant 0 : i32
    %c0_i32_2 = arith.constant 0 : i32
    return %c0_i32, %c0_i32_0, %c0_i32_1 : i32, i32, i32
  }
  func.func @transform_5(%arg0: i32) -> (i32, i32, i32) {
    %c0_i32 = arith.constant 0 : i32
    %c0_i32_0 = arith.constant 0 : i32
    %c0_i32_1 = arith.constant 0 : i32
    %c0_i32_2 = arith.constant 0 : i32
    return %c0_i32, %c0_i32_0, %c0_i32_1 : i32, i32, i32
  }
  func.func @transform_6(%arg0: i32) -> (i32, i32, i32) {
    %c0_i32 = arith.constant 0 : i32
    %c0_i32_0 = arith.constant 0 : i32
    %c0_i32_1 = arith.constant 0 : i32
    %c0_i32_2 = arith.constant 0 : i32
    return %c0_i32, %c0_i32_0, %c0_i32_1 : i32, i32, i32
  }
  func.func @transform_7(%arg0: i32) -> (i32, i32, i32) {
    %c0_i32 = arith.constant 0 : i32
    %c0_i32_0 = arith.constant 0 : i32
    %c0_i32_1 = arith.constant 0 : i32
    %c0_i32_2 = arith.constant 0 : i32
    return %c0_i32, %c0_i32_0, %c0_i32_1 : i32, i32, i32
  }
  func.func @transform_8(%arg0: i32) -> (i32, i32, i32) {
    %c0_i32 = arith.constant 0 : i32
    %c0_i32_0 = arith.constant 0 : i32
    %c0_i32_1 = arith.constant 0 : i32
    %c0_i32_2 = arith.constant 0 : i32
    return %c0_i32, %c0_i32_0, %c0_i32_1 : i32, i32, i32
  }
  func.func @transform_9(%arg0: i32) -> (i32, i32, i32) {
    %c0_i32 = arith.constant 0 : i32
    %c0_i32_0 = arith.constant 0 : i32
    %c0_i32_1 = arith.constant 0 : i32
    %c0_i32_2 = arith.constant 0 : i32
    return %c0_i32, %c0_i32_0, %c0_i32_1 : i32, i32, i32
  }
  func.func @transform_10(%arg0: i32) -> (i32, i32) {
    %c0_i32 = arith.constant 0 : i32
    %c0_i32_0 = arith.constant 0 : i32
    %c0_i32_1 = arith.constant 0 : i32
    return %c0_i32, %c0_i32_0 : i32, i32
  }
  func.func @transform_11(%arg0: i32) -> (i32, i32) {
    %c0_i32 = arith.constant 0 : i32
    %c0_i32_0 = arith.constant 0 : i32
    %c0_i32_1 = arith.constant 0 : i32
    return %c0_i32, %c0_i32_0 : i32, i32
  }
  func.func @transform_12(%arg0: i32) -> (i32, i32, i32) {
    %c0_i32 = arith.constant 0 : i32
    %c0_i32_0 = arith.constant 0 : i32
    %c0_i32_1 = arith.constant 0 : i32
    return %arg0, %c0_i32, %c0_i32_0 : i32, i32, i32
  }
}

</mosaic_0001>

<bundles_post_ra>
// kernel: language_model_forward.1
= control target key start
LH: loop header
LB: loop body
LE: loop exit
PB: predicated region body
PF: predicated region fallthrough
CT: control target
= control target key end

     0   :  { %s1981_s0 = inlined_call_operand.vmem [shape: f32[2,8,32], index: 0, kind: input, shape index: {}]   ;;  %s1982_s1 = inlined_call_operand.vmem [shape: f32[2,1,8], index: 1, kind: input, shape index: {}]   ;;  %s1983_s2 = inlined_call_operand.vmem [shape: f32[2,32], index: 2, kind: input, shape index: {}]   ;;  %s1984_s3 = inlined_call_operand.vmem [shape: bf16[2,32,96], index: 3, kind: input, shape index: {}]   ;;  %s1985_s4 = inlined_call_operand.vmem [shape: f32[2,1,96], index: 4, kind: input, shape index: {}]   ;;  %s1986_s5 = inlined_call_operand.vmem [shape: bf16[2,32,32], index: 5, kind: input, shape index: {}]   ;;  %s1987_s6 = inlined_call_operand.vmem [shape: bf16[2,32,64], index: 6, kind: input, shape index: {}]   ;;  %s1988_s7 = inlined_call_operand.vmem [shape: f32[2,1,64], index: 7, kind: input, shape index: {}]   ;;  %s1989_s8 = inlined_call_operand.vmem [shape: bf16[2,64,32], index: 8, kind: input, shape index: {}]   ;;  %s1990_s9 = inlined_call_operand.vmem [shape: f32[2,6,32], index: 9, kind: input, shape index: {}]   ;;  %s1991_s10 = inlined_call_operand.vmem [shape: bf16[32,128], index: 10, kind: input, shape index: {}]   ;;  %s1992_s11 = inlined_call_operand.vmem [shape: f32[1,128], index: 11, kind: input, shape index: {}]   ;;  %s1993_s12 = inlined_call_operand.hbm [shape: f32[2,8,128], index: 12, kind: output, shape index: {}]  }
   0x1   :  { %2000 = sst [smem:[#allocation5_spill]] %s1981_s0 }
   0x2   :  { %2001 = sst [smem:[#allocation6_spill]] %s1982_s1 }
   0x3   :  { %17 = vsyncpa [#allocation3], 0 }
   0x4   :  { %19 = vsyncpa [#allocation3 + $0x1], 0  ;;  %s1693_s21 = smov 0   ;;  %s1695_s22 = smov 0  }
   0x5   :  { %s1697_s23 = smov 0   ;;  %s1699_s24 = smov 0  }
   0x6 LB: > { %s1714_s25 = sadd.s32 4294967295, %s1619_s24   ;;  %s1309_s26 = sadd.s32 4294967294, %s1619_s24   ;;  %s1619_s24 = sphi %s1699_s24, %s2015_s24   ;;  %s1615_s23 = sphi %s1697_s23, %s2014_s23   ;;  %s1611_s22 = sphi %s1695_s22, %s2013_s22   ;;  %s1607_s21 = sphi %s1693_s21, %s2012_s21  }
   0x7   : > { %s1718_s27 = sadd.s32 1, %s1619_s24   ;;  %s294_s28 = sadd.s32 1, %s1615_s23 }
   0x8   : > { %s291_s29 = ssub.s32 %s1619_s24, %s1718_s27  ;;  %p304_p0 = scmp.ne.s32.totalorder %s1615_s23, %s1611_s22 }
   0x9   : > { %p292_p1 = scmp.eq.s32.totalorder %s291_s29, 0  ;;  %p305_p2 = scmp.eq.s32.totalorder %s1714_s25, 1 }
   0xa   : > { %p310_p3 = scmp.ne.s32.totalorder %s1611_s22, %s1607_s21  ;;  %p311_p4 = scmp.eq.s32.totalorder %s1309_s26, 1 }
   0xb   : > { %s1729_s30 = scalar_select %p292_p1, %s1615_s23, %s294_s28  }
   0xc   : > { %p1731_p5 = por %p305_p2, %p304_p0  ;;  %p1735_p6 = por %p311_p4, %p310_p3 }
   0xd   : > { %p1312_p7 = scmp.ge.s32.totalorder %s1619_s24, 1  ;;  %p372_p8 = scmp.lt.s32.totalorder %s1619_s24, 3 }
   0xf   : > { %p373_p9 = pnand %p1312_p7, %p372_p8 }
  0x10   : > { %p416_p10 = scmp.lt.s32.totalorder (!%p373_p9), %s1714_s25, 1  ;;  %s2004_s1 = sld [smem:[#allocation6_spill]] (!%p373_p9) }
  0x11   : > { %376 = sbr.rel (%p373_p9) target bundleno = 4428 (0x114c), region = 68  ;;  %s2005_s0 = sld [smem:[#allocation5_spill]] (!%p373_p9) }
  0x12   : > { %s1996_s17 = smov (!%p373_p9), 96   ;;  %s1998_s18 = smov (!%p373_p9), 80  }
  0x13   : > { %s1995_s20 = smov (!%p373_p9), 16   ;;  %s2007_s26 = smov (!%p373_p9), 80  }
  0x14   : > { %s2009_s29 = smov (!%p373_p9), 96  }
  0x16   : > { %s1743_s15 = scalar_select %p416_p10, %s1714_s25, 1  ;;  %vm427_vm0 = vcmask 261120   ;;  %v1621_v2 = vmov 32.0   ;;  %v1448_v14 = vld [vmem:[%s1984_s3 + $0x8] sm:$0xff]  ;;  %v1447_v15 = vld [vmem:[%s1984_s3] sm:$0xff]  ;;  %vm505_vm5 = vcmask 130048  }
  0x17   : > { %1521 = vrcp.f32 %v1621_v2  ;;  %492 = vmatpush.bf16.msra.mxu0 %v1448_v14  ;;  %v425_v24 = vld [vmem:[%s1983_s2] sm:$0x3]  ;;  %vm530_vm6 = vcmask 64512   ;;  %vm548_vm7 = vcmask 1043456   ;;  %vm769_vm11 = vcmask 523264  }
  0x18   : > { %s1314_s16 = sshll.u32 %s1743_s15, 3  ;;  %s422_s19 = scalar_lea.vmem %s2004_s1, %s1743_s15  ;;  %v457_v26 = vperm.slane %v425_v24, 0  ;;  %v459_v29 = vperm.slane %v425_v24, 1  ;;  %v1516_v33 = vld [vmem:[%s1985_s4] ss:$0 sm:$0xff] }
  0x19   : > { %s419_s28 = scalar_lea.vmem %s2005_s0, %s1314_s16  ;;  %s1999_s16 = smov 112   ;;  %v1788_v45 = vld [vmem:[%s422_s19] ss:$0 sm:$0xff] }
  0x1a   : > { %v426_v0 = vld [vmem:[%s419_s28] sm:$0xff]  ;;  %s1997_s15 = smov 48   ;;  %s1994_s19 = smov 64  }
  0x1b   : > { %v428_v1 = vsel %vm427_vm0, %v426_v0, 0.0  ;;  %493 = vmatpush.bf16.msra.mxu0 %v1447_v15  ;;  %v1450_v15 = vld [vmem:[%s1986_s5 + $0x8] sm:$0xff]  ;;  %v1814_v24 = vld [vmem:[%s1990_s9] sm:$0x3f]  ;;  %s2008_s28 = smov 48   ;;  %s2010_s0 = smov 64  }
  0x1c   : > { %429 = vadd.xlane.f32.xlu0 %v428_v1 }
  0x1d   : > { %v1522_v3 = vpop.eup %1521 }
  0x1e   : > { %v432_v4 = vmul.f32 32.0, %v1522_v3  ;;  %vm436_vm1 = vweird.f32 %v1522_v3 }
  0x1f   : > { %655 = vmatpush.bf16.msrb.mxu0 %v1450_v15 }
  0x20   : > { %v433_v5 = vsub.f32 1.0, %v432_v4 }
  0x22   : > { %v434_v6 = vmul.f32 %v1522_v3, %v433_v5 }
  0x24   : > { %v435_v7 = vadd.f32 %v1522_v3, %v434_v6 }
  0x26   : > { %v1754_v8 = vsel %vm436_vm1, %v1522_v3, %v435_v7 }
  0x8f   : > { %v430_v9 = vpop.xlane.xlu0 %429 }
  0x90   : > { %v438_v10 = vmul.f32 %v1754_v8, %v430_v9 }
  0x92   : > { %v439_v11 = vsub.f32 %v426_v0, %v438_v10 }
  0x94   : > { %v440_v12 = vmul.f32 %v439_v11, %v439_v11 }
  0x96   : > { %v441_v13 = vsel %vm427_vm0, %v440_v12, 0.0 }
  0x97   : > { %442 = vadd.xlane.f32.xlu0 %v441_v13 }
 0x10a   : > { %v443_v16 = vpop.xlane.xlu0 %442 }
 0x10b   : > { %v444_v17 = vmul.f32 %v443_v16, %v1754_v8 }
 0x10d   : > { %v445_v18 = vadd.f32 1e-12, %v444_v17 }
 0x10f   : > { %1523 = vrsqrt.f32 %v445_v18  ;;  %vm452_vm3 = vweird.f32 %v445_v18 }
 0x115   : > { %v1524_v19 = vpop.eup %1523 }
 0x116   : > { %v447_v20 = vmul.f32 %v1524_v19, %v445_v18  ;;  %vm453_vm2 = vweird.f32 %v1524_v19 }
 0x117   : > { %vm454_vm4 = vmor %vm452_vm3, %vm453_vm2 }
 0x118   : > { %v448_v21 = vmul.f32 %v1524_v19, %v447_v20  ;;  %v1449_v20 = vld [vmem:[%s1986_s5] sm:$0xff] }
 0x119   : > { %656 = vmatpush.bf16.msrb.mxu0 %v1449_v20 }
 0x11a   : > { %v449_v22 = vmul.f32 0.5, %v448_v21 }
 0x11c   : > { %v450_v23 = vsub.f32 1.5, %v449_v22 }
 0x11e   : > { %v451_v25 = vmul.f32 %v1524_v19, %v450_v23 }
 0x120   : > { %v455_v27 = vsel %vm454_vm4, %v1524_v19, %v451_v25  ;;  %v633_v25 = vperm.slane %v1814_v24, 0 }
 0x121   : > { %v456_v28 = vmul.f32 %v455_v27, %v439_v11 }
 0x123   : > { %v458_v30 = vmul.f32 %v457_v26, %v456_v28 }
 0x125   : > { %v1768_v31 = vadd.f32 %v459_v29, %v458_v30 }
 0x127   : > { %v462_v32 = vpack.c.bf16 %v1768_v31, %v1768_v31 }
 0x129   : > { %1323 = vmatmul.msk.bf16.vlgmr.msra.gmra.mxu0 %vm427_vm0, %v462_v32 }
 0x1a6   : > { %v495_v34 = vpop.f32.mrf.mxu0 }
 0x1a7   : > { %v496_v35 = vadd.f32 %v1516_v33, %v495_v34 }
 0x1a9   : > { %v499_v36 = vpack.c.bf16 %v496_v35, %v496_v35 }
 0x1ab   : > { %v501_v37 = vunpack.c.l.b16 %v499_v36 }
 0x1ad   : > { %v502_v38 = vpack.c.b16 %v501_v37, %v501_v37  ;;  %v1452_v37 = vld [vmem:[%s1987_s6 + $0x8] sm:$0xff] }
 0x1ae   : > { %v497_v39 = vpop.f32.mrf.mxu0 }
 0x1af   : > { %565 = vrot.lane.b32.xlu2 %v502_v38, %s1999_s16  ;;  %503 = vrot.lane.b32.xlu1 %v502_v38, %s1996_s17 }
 0x1b7   : > { %567 = vrot.lane.b32.xlu1 %v502_v38, %s1998_s18  ;;  %s2011_s18 = smov 16  }
 0x209   : > { %v566_v44 = vpop.permute.xlu2 %565 }
 0x221   : > { %v504_v40 = vpop.permute.xlu1 %503 }
 0x222   : > { %v510_v41 = vsel %vm505_vm5, %v504_v40, 0 }
 0x223   : > { %519 = vmatpush.bf16.xpose.msra.mxu1 %v510_v41 }
 0x229   : > { %v568_v42 = vpop.permute.xlu1 %567 }
 0x22a   : > { %1324 = vmatmul.msk.bf16.vlgmr.msra.gmra.mxu1 %vm505_vm5, %v499_v36  ;;  %v573_v43 = vsel %vm505_vm5, %v568_v42, 0 }
 0x22b   : > { %582 = vmatpush.bf16.xpose.msra.mxu3 %v573_v43  ;;  %719 = vmatpush.bf16.msrb.mxu1 %v1452_v37 }
 0x232   : > { %1326 = vmatmul.msk.bf16.vlgmr.msra.gmra.mxu3 %vm505_vm5, %v566_v44 }
 0x2a7   : > { %v521_v46 = vpop.f32.mrf.mxu1 }
 0x2a8   : > { %v525_v47 = vmul.f32 0.25, %v521_v46 }
 0x2aa   : > { %v529_v48 = vadd.f32 %v1788_v45, %v525_v47 }
 0x2ac   : > { %v531_v49 = vsel %vm530_vm6, %v529_v48, -inf }
 0x2ad   : > { %532 = vmax.xlane.f32.xlu2 %v531_v49 }
 0x2af   : > { %v523_v50 = vpop.f32.mrf.mxu1 }
 0x2b5   : > { %v584_v51 = vpop.f32.mrf.mxu3 }
 0x2b6   : > { %v588_v52 = vmul.f32 0.25, %v584_v51  ;;  %v687_v51 = vperm.slane %v1814_v24, 2 }
 0x2b8   : > { %v589_v53 = vadd.f32 %v1788_v45, %v588_v52 }
 0x2ba   : > { %v590_v54 = vsel %vm530_vm6, %v589_v53, -inf }
 0x2bb   : > { %591 = vmax.xlane.f32.xlu0 %v590_v54 }
 0x2bd   : > { %v586_v55 = vpop.f32.mrf.mxu3 }
 0x2be   : > { %v1456_v55 = vld [vmem:[%s1989_s8 + $0x18] sm:$0xff] }
 0x2bf   : > { %777 = vmatpush.bf16.msrb.mxu3 %v1456_v55 }
 0x2c5   : > { %602 = vrot.lane.b32.xlu2 %v502_v38, %s1997_s15 }
 0x2cf   : > { %543 = vrot.lane.b32.xlu0 %v502_v38, %s1994_s19  ;;  %s2006_s19 = smov 112  }
 0x320   : > { %v533_v56 = vpop.xlane.xlu2 %532 }
 0x321   : > { %v534_v57 = vsub.f32 %v529_v48, %v533_v56  ;;  %v685_v48 = vperm.slane %v1814_v24, 1  ;;  %v1455_v56 = vld [vmem:[%s1989_s8 + $0x10] sm:$0xff] }
 0x322   : > { %778 = vmatpush.bf16.msrb.mxu3 %v1455_v56 }
 0x323   : > { %v535_v58 = vmul.f32 1.442695, %v534_v57  ;;  %v1454_v57 = vld [vmem:[%s1989_s8 + $0x8] sm:$0xff] }
 0x325   : > { %1525 = vpow2.f32 %v535_v58  ;;  %v1453_v58 = vld [vmem:[%s1989_s8] sm:$0xff] }
 0x326   : > { %779 = vmatpush.bf16.msrb.mxu3 %v1454_v57 }
 0x328   : > { %v603_v2 = vpop.permute.xlu2 %602 }
 0x329   : > { %v608_v5 = vsel %vm548_vm7, %v603_v2, 0 }
 0x32a   : > { %780 = vmatpush.bf16.msrb.mxu3 %v1453_v58 }
 0x32b   : > { %v1526_v59 = vpop.eup %1525 }
 0x32c   : > { %v537_v60 = vsel %vm530_vm6, %v1526_v59, 0.0 }
 0x32d   : > { %538 = vadd.xlane.f32.xlu1 %v537_v60 }
 0x32e   : > { %v592_v61 = vpop.xlane.xlu0 %591 }
 0x32f   : > { %v593_v62 = vsub.f32 %v589_v53, %v592_v61 }
 0x331   : > { %v594_v63 = vmul.f32 1.442695, %v593_v62 }
 0x333   : > { %1527 = vpow2.f32 %v594_v63 }
 0x339   : > { %v1528_v0 = vpop.eup %1527 }
 0x33a   : > { %v596_v1 = vsel %vm530_vm6, %v1528_v0, 0.0 }
 0x33b   : > { %597 = vadd.xlane.f32.xlu0 %v596_v1 }
 0x341   : > { %v544_v3 = vpop.permute.xlu0 %543 }
 0x342   : > { %v550_v4 = vsel %vm548_vm7, %v544_v3, 0 }
 0x343   : > { %559 = vmatpush.bf16.msra.mxu2 %v550_v4 }
 0x347   : > { %617 = vmatpush.bf16.msrb.mxu2 %v608_v5 }
 0x3a0   : > { %v539_v6 = vpop.xlane.xlu1 %538 }
 0x3a1   : > { %1529 = vrcp.f32 %v539_v6 }
 0x3a7   : > { %v1530_v7 = vpop.eup %1529 }
 0x3a8   : > { %v541_v9 = vmul.f32 %v1530_v7, %v1526_v59  ;;  %v1517_v59 = vld [vmem:[%s1988_s7] ss:$0 sm:$0xff] }
 0x3aa   : > { %v542_v10 = vpack.c.bf16 %v541_v9, %v541_v9 }
 0x3ac   : > { %1325 = vmatmul.msk.bf16.vlgmr.msra.gmra.mxu2 %vm530_vm6, %v542_v10  ;;  %v744_v10 = vperm.slane %v1814_v24, 3 }
 0x3ae   : > { %v598_v11 = vpop.xlane.xlu0 %597 }
 0x3af   : > { %1531 = vrcp.f32 %v598_v11 }
 0x3b5   : > { %v1532_v12 = vpop.eup %1531 }
 0x3b6   : > { %v600_v13 = vmul.f32 %v1532_v12, %v1528_v0 }
 0x3b8   : > { %v601_v14 = vpack.c.bf16 %v600_v13, %v600_v13 }
 0x3bc   : > { %1327 = vmatmul.msk.bf16.vlgmr.msrb.gmra.mxu2 %vm530_vm6, %v601_v14 }
 0x42f   : > { %v561_v16 = vpop.f32.mrf.mxu2 }
 0x437   : > { %v563_v17 = vpop.f32.mrf.mxu2 }
 0x43f   : > { %v619_v18 = vpop.f32.mrf.mxu2 }
 0x440   : > { %624 = vrot.lane.b32.xlu1 %v619_v18, %s1995_s20 }
 0x447   : > { %v621_v19 = vpop.f32.mrf.mxu2 }
 0x4b2   : > { %v625_v21 = vpop.permute.xlu1 %624 }
 0x4b3   : > { %v627_v22 = vsel %vm505_vm5, %v561_v16, %v625_v21  ;;  %v1458_v21 = vld [vmem:[%s1984_s3 + $0x18] sm:$0xff] }
 0x4b4   : > { %v628_v23 = vpack.c.bf16 %v627_v22, %v627_v22  ;;  %847 = vmatpush.bf16.msra.mxu2 %v1458_v21  ;;  %v1457_v22 = vld [vmem:[%s1984_s3 + $0x10] sm:$0xff] }
 0x4b6   : > { %1336 = vmatmul.msk.bf16.vlgmr.msrb.gmra.mxu0 %vm427_vm0, %v628_v23 }
 0x4b8   : > { %848 = vmatpush.bf16.msra.mxu2 %v1457_v22 }
 0x533   : > { %v658_v26 = vpop.f32.mrf.mxu0 }
 0x534   : > { %v659_v27 = vadd.f32 %v658_v26, %v633_v25 }
 0x536   : > { %v662_v28 = vadd.f32 %v659_v27, %v1768_v31  ;;  %v1451_v31 = vld [vmem:[%s1987_s6] sm:$0xff] }
 0x537   : > { %720 = vmatpush.bf16.msrb.mxu1 %v1451_v31 }
 0x538   : > { %v663_v29 = vsel %vm427_vm0, %v662_v28, 0.0 }
 0x539   : > { %664 = vadd.xlane.f32.xlu2 %v663_v29 }
 0x53b   : > { %v660_v30 = vpop.f32.mrf.mxu0 }
 0x5ac   : > { %v665_v32 = vpop.xlane.xlu2 %664 }
 0x5ad   : > { %v666_v33 = vmul.f32 %v665_v32, %v1754_v8 }
 0x5af   : > { %v667_v34 = vsub.f32 %v662_v28, %v666_v33 }
 0x5b1   : > { %v668_v35 = vmul.f32 %v667_v34, %v667_v34 }
 0x5b3   : > { %v669_v36 = vsel %vm427_vm0, %v668_v35, 0.0 }
 0x5b4   : > { %670 = vadd.xlane.f32.xlu1 %v669_v36  ;;  %v811_v36 = vperm.slane %v1814_v24, 5 }
 0x627   : > { %v671_v38 = vpop.xlane.xlu1 %670 }
 0x628   : > { %v672_v39 = vmul.f32 %v671_v38, %v1754_v8 }
 0x62a   : > { %v673_v40 = vadd.f32 1e-12, %v672_v39 }
 0x62c   : > { %1533 = vrsqrt.f32 %v673_v40  ;;  %vm680_vm9 = vweird.f32 %v673_v40 }
 0x632   : > { %v1534_v41 = vpop.eup %1533 }
 0x633   : > { %v675_v42 = vmul.f32 %v1534_v41, %v673_v40  ;;  %vm681_vm8 = vweird.f32 %v1534_v41  ;;  %v1518_v40 = vld [vmem:[%s1985_s4 + $0x1] ss:$0 sm:$0xff] }
 0x634   : > { %vm682_vm10 = vmor %vm680_vm9, %vm681_vm8 }
 0x635   : > { %v676_v43 = vmul.f32 %v1534_v41, %v675_v42 }
 0x637   : > { %v677_v44 = vmul.f32 0.5, %v676_v43 }
 0x639   : > { %v678_v46 = vsub.f32 1.5, %v677_v44 }
 0x63b   : > { %v679_v47 = vmul.f32 %v1534_v41, %v678_v46 }
 0x63d   : > { %v683_v49 = vsel %vm682_vm10, %v1534_v41, %v679_v47 }
 0x63e   : > { %v684_v50 = vmul.f32 %v683_v49, %v667_v34  ;;  %v809_v34 = vperm.slane %v1814_v24, 4 }
 0x640   : > { %v686_v52 = vmul.f32 %v685_v48, %v684_v50 }
 0x642   : > { %v688_v53 = vadd.f32 %v687_v51, %v686_v52 }
 0x644   : > { %v689_v54 = vpack.c.bf16 %v688_v53, %v688_v53 }
 0x646   : > { %1345 = vmatmul.msk.bf16.vlgmr.msrb.gmra.mxu1 %vm427_vm0, %v689_v54 }
 0x6c3   : > { %v722_v60 = vpop.f32.mrf.mxu1 }
 0x6c4   : > { %v723_v61 = vadd.f32 %v1517_v59, %v722_v60 }
 0x6c6   : > { %v726_v62 = vmul.f32 %v723_v61, %v723_v61 }
 0x6c8   : > { %v727_v63 = vmul.f32 %v726_v62, %v723_v61 }
 0x6ca   : > { %v728_v0 = vmul.f32 0.044715, %v727_v63 }
 0x6cb   : > { %v724_v1 = vpop.f32.mrf.mxu1 }
 0x6cc   : > { %v729_v2 = vadd.f32 %v728_v0, %v723_v61 }
 0x6ce   : > { %v730_v3 = vmul.f32 0.7978846, %v729_v2 }
 0x6d0   : > { %1535 = vtanh.f32 %v730_v3 }
 0x6d6   : > { %v1536_v4 = vpop.eup %1535 }
 0x6d7   : > { %v732_v5 = vadd.f32 1.0, %v1536_v4 }
 0x6d9   : > { %v733_v6 = vmul.f32 0.5, %v732_v5 }
 0x6db   : > { %v734_v7 = vmul.f32 %v733_v6, %v723_v61 }
 0x6dd   : > { %v735_v9 = vpack.c.bf16 %v734_v7, %v734_v7 }
 0x6df   : > { %1362 = vmatmul.msk.bf16.vlgmr.msrb.gmra.mxu3 %vm769_vm11, %v735_v9 }
 0x762   : > { %v782_v11 = vpop.f32.mrf.mxu3 }
 0x763   : > { %v783_v12 = vadd.f32 %v782_v11, %v744_v10 }
 0x765   : > { %v786_v13 = vadd.f32 %v783_v12, %v688_v53 }
 0x767   : > { %v787_v14 = vsel %vm427_vm0, %v786_v13, 0.0 }
 0x768   : > { %788 = vadd.xlane.f32.xlu0 %v787_v14 }
 0x76a   : > { %v784_v15 = vpop.f32.mrf.mxu3 }
 0x7db   : > { %v789_v16 = vpop.xlane.xlu0 %788 }
 0x7dc   : > { %v790_v17 = vmul.f32 %v789_v16, %v1754_v8 }
 0x7de   : > { %v791_v18 = vsub.f32 %v786_v13, %v790_v17 }
 0x7e0   : > { %v792_v19 = vmul.f32 %v791_v18, %v791_v18 }
 0x7e2   : > { %v793_v20 = vsel %vm427_vm0, %v792_v19, 0.0 }
 0x7e3   : > { %794 = vadd.xlane.f32.xlu0 %v793_v20  ;;  %v1460_v20 = vld [vmem:[%s1986_s5 + $0x18] sm:$0xff] }
 0x856   : > { %v795_v23 = vpop.xlane.xlu0 %794 }
 0x857   : > { %v796_v25 = vmul.f32 %v795_v23, %v1754_v8 }
 0x859   : > { %v797_v26 = vadd.f32 1e-12, %v796_v25 }
 0x85b   : > { %1537 = vrsqrt.f32 %v797_v26  ;;  %vm804_vm13 = vweird.f32 %v797_v26 }
 0x861   : > { %v1538_v27 = vpop.eup %1537 }
 0x862   : > { %v799_v28 = vmul.f32 %v1538_v27, %v797_v26  ;;  %vm805_vm12 = vweird.f32 %v1538_v27  ;;  %v1459_v26 = vld [vmem:[%s1986_s5 + $0x10] sm:$0xff] }
 0x863   : > { %vm806_vm14 = vmor %vm804_vm13, %vm805_vm12 }
 0x864   : > { %v800_v29 = vmul.f32 %v1538_v27, %v799_v28 }
 0x866   : > { %v801_v30 = vmul.f32 0.5, %v800_v29 }
 0x868   : > { %v802_v32 = vsub.f32 1.5, %v801_v30  ;;  %v1899_v30 = vld [vmem:[%s1990_s9 + $0x8] sm:$0x3f] }
 0x86a   : > { %v803_v33 = vmul.f32 %v1538_v27, %v802_v32  ;;  %v983_v32 = vperm.slane %v1899_v30, 0 }
 0x86c   : > { %v807_v35 = vsel %vm806_vm14, %v1538_v27, %v803_v33 }
 0x86d   : > { %v808_v37 = vmul.f32 %v807_v35, %v791_v18 }
 0x86f   : > { %v810_v31 = vmul.f32 %v809_v34, %v808_v37 }
 0x871   : > { %v1860_v38 = vadd.f32 %v811_v36, %v810_v31 }
 0x873   : > { %v815_v39 = vpack.c.bf16 %v1860_v38, %v1860_v38 }
 0x875   : > { %1377 = vmatmul.msk.bf16.vlgmr.msra.gmra.mxu2 %vm427_vm0, %v815_v39 }
 0x8f8   : > { %v850_v41 = vpop.f32.mrf.mxu2 }
 0x8f9   : > { %v851_v42 = vadd.f32 %v1518_v40, %v850_v41 }
 0x8fb   : > { %v854_v43 = vpack.c.bf16 %v851_v42, %v851_v42 }
 0x8fd   : > { %v856_v44 = vunpack.c.l.b16 %v854_v43 }
 0x8ff   : > { %v857_v46 = vpack.c.b16 %v856_v44, %v856_v44 }
 0x900   : > { %v852_v47 = vpop.f32.mrf.mxu2 }
 0x901   : > { %914 = vrot.lane.b32.xlu2 %v857_v46, %s2006_s19  ;;  %916 = vrot.lane.b32.xlu0 %v857_v46, %s2007_s26 }
 0x909   : > { %951 = vrot.lane.b32.xlu2 %v857_v46, %s2008_s28  ;;  %858 = vrot.lane.b32.xlu0 %v857_v46, %s2009_s29  ;;  %s413_s28 = sand.u32 1, %s1611_s22  }
 0x90a   : > { %s1313_s29 = sshll.u32 %s413_s28, 3 }
 0x90b   : > { %s415_s15 = scalar_lea.vmem [#allocation2], %s1313_s29  ;;  %s1577_s29 = scalar_lea.hbm %s1993_s12, 16 }
 0x90c   : > { %s1238_s20 = sshll.u32 %s415_s15, 4  ;;  %s1239_s20 = int_to_ptr.vmem [resolvable:$true] %s1238_s20 }
 0x911   : > { %893 = vrot.lane.b32.xlu2 %v857_v46, %s2010_s0  ;;  %s1444_s0 = sshll.u32 %s1714_s25, 3  ;;  %s1226_s25 = scalar_lea.sflag [#allocation3], %s413_s28 }
 0x95b   : > { %v915_v24 = vpop.permute.xlu2 %914 }
 0x963   : > { %v952_v48 = vpop.permute.xlu2 %951 }
 0x964   : > { %v957_v49 = vsel %vm548_vm7, %v952_v48, 0 }
 0x965   : > { %966 = vmatpush.bf16.msrb.mxu2 %v957_v49 }
 0x96b   : > { %v894_v50 = vpop.permute.xlu2 %893 }
 0x96c   : > { %v899_v51 = vsel %vm548_vm7, %v894_v50, 0 }
 0x96d   : > { %908 = vmatpush.bf16.msra.mxu1 %v899_v51 }
 0x973   : > { %v917_v52 = vpop.permute.xlu0 %916 }
 0x974   : > { %v922_v53 = vsel %vm505_vm5, %v917_v52, 0 }
 0x975   : > { %931 = vmatpush.bf16.xpose.msra.mxu3 %v922_v53  ;;  %v1035_v53 = vperm.slane %v1899_v30, 1 }
 0x97b   : > { %v859_v54 = vpop.permute.xlu0 %858 }
 0x97c   : > { %v864_v55 = vsel %vm505_vm5, %v859_v54, 0  ;;  %1380 = vmatmul.msk.bf16.vlgmr.msra.gmra.mxu3 %vm505_vm5, %v915_v24 }
 0x97d   : > { %873 = vmatpush.bf16.xpose.msra.mxu0 %v864_v55  ;;  %v1037_v55 = vperm.slane %v1899_v30, 2 }
 0x984   : > { %1378 = vmatmul.msk.bf16.vlgmr.msra.gmra.mxu0 %vm505_vm5, %v854_v43  ;;  %v1462_v43 = vld [vmem:[%s1987_s6 + $0x18] sm:$0xff] }
 0x985   : > { %1005 = vmatpush.bf16.msrb.mxu0 %v1460_v20  ;;  %1071 = vmatpush.bf16.msrb.mxu1 %v1462_v43 }
 0x989   : > { %1006 = vmatpush.bf16.msrb.mxu0 %v1459_v26  ;;  %v1468_v26 = vld [vmem:[%s1991_s10 + $0x8] sm:$0xff] }
 0x98a   : > { %1195 = vmatpush.bf16.msra.mxu2 %v1468_v26 }
 0x9ff   : > { %v933_v56 = vpop.f32.mrf.mxu3 }
 0xa00   : > { %v937_v57 = vmul.f32 0.25, %v933_v56 }
 0xa01   : > { %v875_v58 = vpop.f32.mrf.mxu0 }
 0xa02   : > { %v879_v59 = vmul.f32 0.25, %v875_v58  ;;  %v938_v60 = vadd.f32 %v1788_v45, %v937_v57 }
 0xa04   : > { %v939_v61 = vsel %vm530_vm6, %v938_v60, -inf  ;;  %v880_v62 = vadd.f32 %v1788_v45, %v879_v59 }
 0xa05   : > { %940 = vmax.xlane.f32.xlu1 %v939_v61  ;;  %v1465_v61 = vld [vmem:[%s1989_s8 + $0x30] sm:$0xff] }
 0xa06   : > { %v881_v63 = vsel %vm530_vm6, %v880_v62, -inf }
 0xa07   : > { %v935_v0 = vpop.f32.mrf.mxu3  ;;  %882 = vmax.xlane.f32.xlu0 %v881_v63  ;;  %v1463_v63 = vld [vmem:[%s1989_s8 + $0x20] sm:$0xff] }
 0xa08   : > { %v1519_v0 = vld [vmem:[%s1988_s7 + $0x1] ss:$0 sm:$0xff] }
 0xa09   : > { %v877_v1 = vpop.f32.mrf.mxu0 }
 0xa78   : > { %v941_v2 = vpop.xlane.xlu1 %940 }
 0xa79   : > { %v942_v3 = vsub.f32 %v938_v60, %v941_v2  ;;  %v1466_v60 = vld [vmem:[%s1989_s8 + $0x38] sm:$0xff] }
 0xa7a   : > { %v883_v4 = vpop.xlane.xlu0 %882  ;;  %1129 = vmatpush.bf16.msrb.mxu3 %v1466_v60 }
 0xa7b   : > { %v943_v5 = vmul.f32 1.442695, %v942_v3  ;;  %v884_v6 = vsub.f32 %v880_v62, %v883_v4  ;;  %v1464_v62 = vld [vmem:[%s1989_s8 + $0x28] sm:$0xff] }
 0xa7d   : > { %1539 = vpow2.f32 %v943_v5  ;;  %v885_v7 = vmul.f32 1.442695, %v884_v6 }
 0xa7e   : > { %1130 = vmatpush.bf16.msrb.mxu3 %v1465_v61 }
 0xa7f   : > { %1541 = vpow2.f32 %v885_v7 }
 0xa82   : > { %1131 = vmatpush.bf16.msrb.mxu3 %v1464_v62 }
 0xa83   : > { %v1540_v9 = vpop.eup %1539 }
 0xa84   : > { %v945_v10 = vsel %vm530_vm6, %v1540_v9, 0.0 }
 0xa85   : > { %946 = vadd.xlane.f32.xlu1 %v945_v10  ;;  %v1542_v11 = vpop.eup %1541 }
 0xa86   : > { %v887_v45 = vsel %vm530_vm6, %v1542_v11, 0.0  ;;  %1132 = vmatpush.bf16.msrb.mxu3 %v1463_v63 }
 0xa8d   : > { %888 = vadd.xlane.f32.xlu1 %v887_v45 }
 0xaf8   : > { %v947_v12 = vpop.xlane.xlu1 %946 }
 0xaf9   : > { %1543 = vrcp.f32 %v947_v12 }
 0xaff   : > { %v1544_v13 = vpop.eup %1543 }
 0xb00   : > { %v949_v14 = vmul.f32 %v1544_v13, %v1540_v9  ;;  %v889_v15 = vpop.xlane.xlu1 %888 }
 0xb01   : > { %1545 = vrcp.f32 %v889_v15 }
 0xb02   : > { %v950_v16 = vpack.c.bf16 %v949_v14, %v949_v14  ;;  %v1097_v14 = vperm.slane %v1899_v30, 3 }
 0xb04   : > { %1381 = vmatmul.msk.bf16.vlgmr.msrb.gmra.mxu2 %vm530_vm6, %v950_v16 }
 0xb07   : > { %v1546_v17 = vpop.eup %1545 }
 0xb08   : > { %v891_v18 = vmul.f32 %v1546_v17, %v1542_v11 }
 0xb0a   : > { %v892_v19 = vpack.c.bf16 %v891_v18, %v891_v18 }
 0xb0c   : > { %1379 = vmatmul.msk.bf16.vlgmr.msra.gmra.mxu1 %vm530_vm6, %v892_v19 }
 0xb87   : > { %v968_v21 = vpop.f32.mrf.mxu2 }
 0xb88   : > { %973 = vrot.lane.b32.xlu1 %v968_v21, %s2011_s18  ;;  %s1236_s18 = scalar_lea.hbm %s1993_s12, %s1444_s0 }
 0xb89   : > { %v910_v22 = vpop.f32.mrf.mxu1  ;;  %s1240_s19 = sshll.u32 %s1236_s18, 4  ;;  %s1241_s19 = int_to_ptr.hbm [resolvable:$true] %s1240_s19 }
 0xb8a   : > { %s1571_s26 = sshra.s32 %s1241_s19, 4  ;;  %s1572_s26 = int_to_ptr.hbm [resolvable:$true] %s1571_s26 }
 0xb8b   : > { %s1573_s16 = scalar_lea.hbm %s1572_s26, 8  ;;  %p1578_p0 = scmp.lt.s32.totalorder %s1572_s26, %s1993_s12 }
 0xb8c   : > { %p1574_p11 = scmp.ne.s32.totalorder %s1572_s26, %s1573_s16  ;;  %p1579_p1 = scmp.lt.s32.totalorder %s1577_s29, %s1573_s16 }
 0xb8e   : > { %p1575_p12 = pnand %p1574_p11, %p1731_p5  ;;  %p1580_p2 = por %p1579_p1, %p1578_p0 }
 0xb8f   : > { %v970_v23 = vpop.f32.mrf.mxu2 }
 0xb90   : > { %p1576_p13 = pneg %p1575_p12 }
 0xb91   : > { %v912_v25 = vpop.f32.mrf.mxu1 }
 0xb92   : > { %p1581_p3 = pnand %p1580_p2, %p1576_p13 }
 0xbfa   : > { %v974_v27 = vpop.permute.xlu1 %973 }
 0xbfb   : > { %v976_v28 = vsel %vm505_vm5, %v910_v22, %v974_v27  ;;  %v1467_v27 = vld [vmem:[%s1991_s10] sm:$0xff] }
 0xbfc   : > { %v977_v29 = vpack.c.bf16 %v976_v28, %v976_v28  ;;  %1196 = vmatpush.bf16.msra.mxu2 %v1467_v27 }
 0xbfe   : > { %1394 = vmatmul.msk.bf16.vlgmr.msrb.gmra.mxu0 %vm427_vm0, %v977_v29 }
 0xc7b   : > { %v1008_v33 = vpop.f32.mrf.mxu0 }
 0xc7c   : > { %v1009_v34 = vadd.f32 %v1008_v33, %v983_v32 }
 0xc7e   : > { %v1012_v35 = vadd.f32 %v1009_v34, %v1860_v38  ;;  %v1461_v38 = vld [vmem:[%s1987_s6 + $0x10] sm:$0xff] }
 0xc7f   : > { %1072 = vmatpush.bf16.msrb.mxu1 %v1461_v38 }
 0xc80   : > { %v1013_v36 = vsel %vm427_vm0, %v1012_v35, 0.0 }
 0xc81   : > { %1014 = vadd.xlane.f32.xlu2 %v1013_v36 }
 0xc83   : > { %v1010_v37 = vpop.f32.mrf.mxu0 }
 0xcf4   : > { %v1015_v31 = vpop.xlane.xlu2 %1014 }
 0xcf5   : > { %v1016_v39 = vmul.f32 %v1015_v31, %v1754_v8 }
 0xcf7   : > { %v1017_v40 = vsub.f32 %v1012_v35, %v1016_v39  ;;  %v1161_v39 = vperm.slane %v1899_v30, 4 }
 0xcf9   : > { %v1018_v41 = vmul.f32 %v1017_v40, %v1017_v40 }
 0xcfb   : > { %v1019_v42 = vsel %vm427_vm0, %v1018_v41, 0.0 }
 0xcfc   : > { %1020 = vadd.xlane.f32.xlu0 %v1019_v42  ;;  %v1163_v42 = vperm.slane %v1899_v30, 5 }
 0xd6f   : > { %v1021_v44 = vpop.xlane.xlu0 %1020 }
 0xd70   : > { %v1022_v46 = vmul.f32 %v1021_v44, %v1754_v8  ;;  %v1520_v44 = vld [vmem:[%s1992_s11] ss:$0 sm:$0xff] }
 0xd72   : > { %v1023_v47 = vadd.f32 1e-12, %v1022_v46 }
 0xd74   : > { %1547 = vrsqrt.f32 %v1023_v47  ;;  %vm1030_vm1 = vweird.f32 %v1023_v47 }
 0xd7a   : > { %v1548_v24 = vpop.eup %1547 }
 0xd7b   : > { %v1025_v48 = vmul.f32 %v1548_v24, %v1023_v47  ;;  %vm1031_vm15 = vweird.f32 %v1548_v24 }
 0xd7c   : > { %vm1032_vm2 = vmor %vm1030_vm1, %vm1031_vm15 }
 0xd7d   : > { %v1026_v49 = vmul.f32 %v1548_v24, %v1025_v48 }
 0xd7f   : > { %v1027_v50 = vmul.f32 0.5, %v1026_v49 }
 0xd81   : > { %v1028_v51 = vsub.f32 1.5, %v1027_v50 }
 0xd83   : > { %v1029_v52 = vmul.f32 %v1548_v24, %v1028_v51 }
 0xd85   : > { %v1033_v54 = vsel %vm1032_vm2, %v1548_v24, %v1029_v52 }
 0xd86   : > { %v1034_v56 = vmul.f32 %v1033_v54, %v1017_v40 }
 0xd88   : > { %v1036_v57 = vmul.f32 %v1035_v53, %v1034_v56 }
 0xd8a   : > { %v1038_v58 = vadd.f32 %v1037_v55, %v1036_v57 }
 0xd8c   : > { %v1039_v59 = vpack.c.bf16 %v1038_v58, %v1038_v58 }
 0xd8e   : > { %1408 = vmatmul.msk.bf16.vlgmr.msrb.gmra.mxu1 %vm427_vm0, %v1039_v59 }
 0xe0b   : > { %v1074_v1 = vpop.f32.mrf.mxu1 }
 0xe0c   : > { %v1075_v2 = vadd.f32 %v1519_v0, %v1074_v1 }
 0xe0e   : > { %v1078_v3 = vmul.f32 %v1075_v2, %v1075_v2 }
 0xe10   : > { %v1079_v4 = vmul.f32 %v1078_v3, %v1075_v2 }
 0xe12   : > { %v1080_v5 = vmul.f32 0.044715, %v1079_v4 }
 0xe13   : > { %v1076_v6 = vpop.f32.mrf.mxu1 }
 0xe14   : > { %v1081_v7 = vadd.f32 %v1080_v5, %v1075_v2 }
 0xe16   : > { %v1082_v9 = vmul.f32 0.7978846, %v1081_v7 }
 0xe18   : > { %1549 = vtanh.f32 %v1082_v9 }
 0xe1e   : > { %v1550_v10 = vpop.eup %1549 }
 0xe1f   : > { %v1084_v11 = vadd.f32 1.0, %v1550_v10 }
 0xe21   : > { %v1085_v45 = vmul.f32 0.5, %v1084_v11 }
 0xe23   : > { %v1086_v12 = vmul.f32 %v1085_v45, %v1075_v2 }
 0xe25   : > { %v1087_v13 = vpack.c.bf16 %v1086_v12, %v1086_v12 }
 0xe27   : > { %1433 = vmatmul.msk.bf16.vlgmr.msrb.gmra.mxu3 %vm769_vm11, %v1087_v13 }
 0xeaa   : > { %v1134_v15 = vpop.f32.mrf.mxu3 }
 0xeab   : > { %v1135_v16 = vadd.f32 %v1134_v15, %v1097_v14 }
 0xead   : > { %v1138_v17 = vadd.f32 %v1135_v16, %v1038_v58 }
 0xeaf   : > { %v1139_v18 = vsel %vm427_vm0, %v1138_v17, 0.0 }
 0xeb0   : > { %1140 = vadd.xlane.f32.xlu1 %v1139_v18 }
 0xeb2   : > { %v1136_v19 = vpop.f32.mrf.mxu3 }
 0xf23   : > { %v1141_v20 = vpop.xlane.xlu1 %1140 }
 0xf24   : > { %v1142_v21 = vmul.f32 %v1141_v20, %v1754_v8 }
 0xf26   : > { %v1143_v22 = vsub.f32 %v1138_v17, %v1142_v21 }
 0xf28   : > { %v1144_v23 = vmul.f32 %v1143_v22, %v1143_v22 }
 0xf2a   : > { %v1145_v25 = vsel %vm427_vm0, %v1144_v23, 0.0 }
 0xf2b   : > { %1146 = vadd.xlane.f32.xlu0 %v1145_v25 }
 0xf9e   : > { %v1147_v28 = vpop.xlane.xlu0 %1146 }
 0xf9f   : > { %v1148_v29 = vmul.f32 %v1147_v28, %v1754_v8 }
 0xfa1   : > { %v1149_v32 = vadd.f32 1e-12, %v1148_v29 }
 0xfa3   : > { %1551 = vrsqrt.f32 %v1149_v32  ;;  %vm1156_vm4 = vweird.f32 %v1149_v32 }
 0xfa9   : > { %v1552_v33 = vpop.eup %1551 }
 0xfaa   : > { %v1151_v34 = vmul.f32 %v1552_v33, %v1149_v32  ;;  %vm1157_vm3 = vweird.f32 %v1552_v33 }
 0xfab   : > { %vm1158_vm5 = vmor %vm1156_vm4, %vm1157_vm3 }
 0xfac   : > { %v1152_v35 = vmul.f32 %v1552_v33, %v1151_v34 }
 0xfae   : > { %v1153_v36 = vmul.f32 0.5, %v1152_v35 }
 0xfb0   : > { %v1154_v37 = vsub.f32 1.5, %v1153_v36 }
 0xfb2   : > { %v1155_v31 = vmul.f32 %v1552_v33, %v1154_v37 }
 0xfb4   : > { %v1159_v40 = vsel %vm1158_vm5, %v1552_v33, %v1155_v31 }
 0xfb5   : > { %v1160_v41 = vmul.f32 %v1159_v40, %v1143_v22 }
 0xfb7   : > { %v1162_v43 = vmul.f32 %v1161_v39, %v1160_v41 }
 0xfb9   : > { %v1164_v38 = vadd.f32 %v1163_v42, %v1162_v43 }
 0xfbb   : > { %v1165_v8 = vpack.c.bf16 %v1164_v38, %v1164_v38 }
 0xfbd   : > { %1442 = vmatmul.msk.bf16.vlgmr.msra.gmra.mxu2 %vm427_vm0, %v1165_v8 }
0x1040   : > { %v1198_v46 = vpop.f32.mrf.mxu2 }
0x1041   : > { %v1199_v47 = vadd.f32 %v1520_v44, %v1198_v46 }
0x1043   : > { %1202 = vmax.xlane.f32.xlu0 %v1199_v47 }
0x1048   : > { %v1200_v24 = vpop.f32.mrf.mxu2 }
0x10b6   : > { %v1203_v48 = vpop.xlane.xlu0 %1202 }
0x10b7   : > { %v1204_v49 = vsub.f32 %v1199_v47, %v1203_v48 }
0x10b9   : > { %v1205_v50 = vmul.f32 1.442695, %v1204_v49 }
0x10bb   : > { %1553 = vpow2.f32 %v1205_v50 }
0x10c1   : > { %v1554_v30 = vpop.eup %1553 }
0x10c2   : > { %1207 = vadd.xlane.f32.xlu2 %v1554_v30 }
0x1135   : > { %v1208_v51 = vpop.xlane.xlu2 %1207 }
0x1136   : > { %1555 = vrcp.f32 %v1208_v51  ;;  %v1220_v55 = vand.u32 2147483648, %v1208_v51  ;;  %v1218_v57 = vand.u32 2147483647, %v1208_v51  ;;  %vm1214_vm6 = vweird.f32 %v1208_v51 }
0x1138   : > { %v1221_v59 = vor.u32 1.1754944e-38, %v1220_v55  ;;  %vm1219_vm8 = vcmp.eq.f32.partialorder %v1218_v57, 8.507059e+37 }
0x113c   : > { %v1556_v52 = vpop.eup %1555 }
0x113d   : > { %v1210_v53 = vmul.f32 %v1556_v52, %v1208_v51  ;;  %vm1215_vm0 = vweird.f32 %v1556_v52 }
0x113e   : > { %vm1216_vm7 = vmor %vm1214_vm6, %vm1215_vm0 }
0x113f   : > { %v1211_v54 = vsub.f32 1.0, %v1210_v53 }
0x1141   : > { %v1212_v56 = vmul.f32 %v1556_v52, %v1211_v54 }
0x1143   : > { %v1213_v58 = vadd.f32 %v1556_v52, %v1212_v56 }
0x1145   : > { %v1217_v60 = vsel %vm1216_vm7, %v1556_v52, %v1213_v58 }
0x1146   : > { %v1222_v61 = vsel %vm1219_vm8, %v1221_v59, %v1217_v60 }
0x1147   : > { %v1223_v62 = vmul.f32 %v1554_v30, %v1222_v61 }
0x1149   : > { %1224 = vst [vmem:[%s415_s15] sm:$0xff] %v1223_v62 }
0x114a   : > { %1584 = shalt.err (!%p1581_p3)
}
0x114b   : > { %1469 = dma.vmem_to_hbm [thread:$0]  (%p1731_p5), %s1239_s20, 128, %s1241_s19, %s1226_s25  }
0x114c PF: > { %p1475_p4 = scmp.ge.s32.totalorder %s1619_s24, 2  ;;  %s1252_s28 = sand.u32 1, %s1607_s21  }
0x114d   : > { %s1253_s15 = scalar_lea.sflag [#allocation3], %s1252_s28 }
0x114e   : > { %p1472_p7 = pnand %p1475_p4, %p1735_p6 }
0x1150   : > { %p1473_p8 = pneg %p1472_p7 }
0x1152   : > { %1602 = dma.done.wait (%p1473_p8), %s1253_s15, 128  }
0x1153   : > { %1604 = vsyncadd (%p1473_p8), %s1253_s15, 4294967168  ;;  %p22_p9 = scmp.ge.s32.totalorder %s1718_s27, 4   ;;  %s2012_s21 = smov %s1611_s22 }
0x1154   : > { %s2013_s22 = smov %s1615_s23  ;;  %s2014_s23 = smov %s1729_s30 }
0x1155   : > { %s2015_s24 = smov %s1718_s27  ;;  %24 = sbr.rel (!%p22_p9) target bundleno = 6 (0x6), region = 113 }
0x115a   :  { %1259 = vsyncpa [#allocation3], 1 }
0x115b   :  { %1261 = vsyncpa [#allocation3 + $0x1], 1 }

</bundles_post_ra>
